<compile_context>
chip_gen: v7x
topology: tpu7x:2x2x1
jax: 0.10.0
libtpu: 0.0.40
codegen_flags: <defaults>
</compile_context>

<pallas_src>
import numpy as np
import jax
import jax.numpy as jnp
from jax.experimental import pallas as pl
from jax.experimental.pallas import tpu as pltpu

# ---- problem sizes (small, consistent with the module) ---------------------
N = 16                 # number of nodes
E = 32                 # number of edges
NUM_HEADS = 4
OUT_DIM = 32           # GraphTransformerLayer out_dim (== in_dim, residual requires it)
IN_DIM = OUT_DIM
D = OUT_DIM // NUM_HEADS   # per-head dim ("out_dim" inside MultiHeadAttentionLayer)
F = NUM_HEADS * D          # == OUT_DIM
LN_EPS = 1e-5

# ---- packed-parameter layout constants --------------------------------------
# w_wide: (F, 1280) bf16 — every segment starts at a multiple of 128 lanes.
NB_K, NB_V, NB_GK = 0, 128, 256        # node block: picked up by the SRC gather
NB_Q, NB_GQ = 384, 512                 # node block: picked up by the DST gather
NG_OFF = 640                           # n_gate lin1 (node-local, not gathered)
NODE_COLS = 768                        # h @ w_wide[:, :NODE_COLS]
SRC_COLS = 384                         # node_proj[:, :384]   -> src gather
DST_COLS = 256                         # node_proj[:, 384:640]-> dst gather
EB_PE, EB_GE = 768, 896                # edge block: wpe | wpe@CCE
EDGE_BASE, EDGE_COLS = 768, 256
C_FHW1, C_FEW1 = 1024, 1152            # FFN layer-1 weights (2F = 64 cols each)
W_WIDE_COLS = 1280

# w_stack: (208, F) bf16 — row offsets all multiples of 16 (bf16 sublane tile).
S_NGW2, S_AVG, S_CONV, S_FHW2, S_FEW2, S_TOTAL = 0, 16, 48, 80, 144, 208

# vecs: (24, 128) f32 — one bias / gain / LN-param vector per row.
V_BK, V_BV, V_BQ, V_BNG1, V_BPE, V_EGB = 0, 1, 2, 3, 4, 5
V_NGG, V_NGBT, V_NGB2 = 6, 7, 8
V_CCG, V_CCBT, V_CONVB = 9, 10, 11
V_FHB1, V_FHB2, V_FEB1, V_FEB2 = 12, 13, 14, 15
V_LNHG, V_LNHB, V_LNEG, V_LNEB = 16, 17, 18, 19
N_VEC_ROWS = 24


# ---------------------------------------------------------------------------
# Pallas kernel: whole forward pass, whole arrays resident in VMEM.
# ---------------------------------------------------------------------------
def _agt_kernel(h_ref, e_ref, src_oh_ref, dst_oh_ref, dst_oh_t_ref,
                w_wide_ref, w_stack_ref, vecs_ref, coef_ref, out_ref):
    f32 = jnp.float32
    bf16 = jnp.bfloat16

    def mm(a, b):
        # Explicit bf16 operands -> single-pass MXU, f32 accumulate
        # (numerically matches default-precision f32 matmuls).
        return jnp.dot(a.astype(bf16), b.astype(bf16), preferred_element_type=f32)

    def sigmoid(x):
        # tanh form: overflow-safe, runs on the EUP slot.
        return 0.5 * jnp.tanh(0.5 * x) + 0.5

    def ln_last(x, g, b):
        mu = jnp.mean(x, axis=-1, keepdims=True)
        var = jnp.mean(jnp.square(x - mu), axis=-1, keepdims=True)
        return (x - mu) * jax.lax.rsqrt(var + LN_EPS) * g + b

    # Small slab of bias / LN vectors (3 vregs) — cheap to keep materialized.
    vecs = vecs_ref[...]

    def vec(row, width):
        return vecs[row:row + 1, 0:width]

    h = h_ref[...]          # (N, F) f32
    e = e_ref[...]          # (E, F) f32

    # ---- fused node / edge projections (weight slab ref-sliced at use) -----
    node_proj = mm(h, w_wide_ref[:, 0:NODE_COLS])                       # (N, 768)
    e_proj = mm(e, w_wide_ref[:, EDGE_BASE:EDGE_BASE + EDGE_COLS])      # (E, 256)

    # ---- gathers: src gather serves K/V/gK, dst gather serves Q/gQ ---------
    src_feat = mm(src_oh_ref[...], node_proj[:, 0:SRC_COLS])            # (E, 384)
    dst_feat = mm(dst_oh_ref[...], node_proj[:, SRC_COLS:SRC_COLS + DST_COLS])  # (E, 256)

    K_src = src_feat[:, NB_K:NB_K + F] + vec(V_BK, F)      # 1/sqrt(D) pre-folded
    V_src = src_feat[:, NB_V:NB_V + F] + vec(V_BV, F)
    gK = src_feat[:, NB_GK:NB_GK + F]                      # K_src @ CCK (bias folded)
    Q_dst = dst_feat[:, 0:F] + vec(V_BQ, F)
    gQ = dst_feat[:, 128:128 + F]                          # Q_dst @ CCQ
    proj_e = e_proj[:, 0:F] + vec(V_BPE, F)
    gE = e_proj[:, 128:128 + F]                            # proj_e @ CCE

    # ---- n_gate MLP (Linear -> LayerNorm -> Tanh -> Linear -> sigmoid) -----
    ng = node_proj[:, NG_OFF:NG_OFF + F // 2] + vec(V_BNG1, F // 2)     # (N, 16)
    ng = jnp.tanh(ln_last(ng, vec(V_NGG, F // 2), vec(V_NGBT, F // 2)))
    ng = mm(ng, w_stack_ref[S_NGW2:S_NGW2 + F // 2, :]) + vec(V_NGB2, F)
    n_gate = sigmoid(ng)                                                # (N, F)

    # ---- attention score: src_dot_dst -> scaling -> imp_exp_attn (= e_out) -
    score = K_src * Q_dst * proj_e
    e_attn = score

    # ---- edge gate: change_channel folded into the projections -------------
    eg = gK + gQ + gE + vec(V_EGB, F)                                   # (E, F)
    mavg = w_stack_ref[S_AVG:S_AVG + F, :]        # per-head averaging matrix (reused 3x)
    mu = mm(eg, mavg)                             # per-head mean, broadcast over D
    m2 = mm(eg * eg, mavg)                        # independent of mu -> MXU overlap
    var = jnp.maximum(m2 - mu * mu, 0.0)
    eg = (eg - mu) * jax.lax.rsqrt(var + LN_EPS) * vec(V_CCG, F) + vec(V_CCBT, F)
    eg = jnp.tanh(eg)

    # ---- both Conv1d(H,H,3,pad=1) folded host-side into ONE band matmul ----
    eg = mm(eg, w_stack_ref[S_CONV:S_CONV + F, :]) + vec(V_CONVB, F)

    # ---- apply_gate, per-head sum (= D * per-head mean), exp(clamp) --------
    eg = score * sigmoid(eg)
    eg_sum = mm(eg, mavg) * float(D)
    a = jnp.exp(jnp.clip(eg_sum, -0.005, 0.005))                        # (E, F)

    # ---- aggregate over incoming edges: plain matmuls vs host-transposed oh
    dst_oh_t = dst_oh_t_ref[...]                                        # (N, E)
    wV = mm(dst_oh_t, V_src * a) * n_gate
    z = mm(dst_oh_t, a)
    h_attn = wV / (z + 1e-30)                    # exact divide (accuracy)  (N, F)

    # ---- learnable residual coefficients ------------------------------------
    c_n1 = coef_ref[0]
    c_n2 = coef_ref[1]
    c_e1 = coef_ref[2]

    # ---- node FFN + residual + LayerNorm -> rows [0, N) ----------------------
    hf = jnp.maximum(
        mm(h_attn, w_wide_ref[:, C_FHW1:C_FHW1 + 2 * F]) + vec(V_FHB1, 2 * F), 0.0)
    hf = mm(hf, w_stack_ref[S_FHW2:S_FHW2 + 2 * F, :]) + vec(V_FHB2, F)
    h_new = c_n1 * h + c_n2 * hf
    out_ref[0:N, :] = ln_last(h_new, vec(V_LNHG, F), vec(V_LNHB, F))

    # ---- edge FFN + residual + LayerNorm -> rows [N, N+E) --------------------
    # NOTE: reference code uses NodeRes_2 (not EdgeRes_2) on the edge FFN
    # branch; reproduced faithfully.
    ef = jnp.maximum(
        mm(e_attn, w_wide_ref[:, C_FEW1:C_FEW1 + 2 * F]) + vec(V_FEB1, 2 * F), 0.0)
    ef = mm(ef, w_stack_ref[S_FEW2:S_FEW2 + 2 * F, :]) + vec(V_FEB2, F)
    e_new = c_e1 * e + c_n2 * ef
    out_ref[N:N + E, :] = ln_last(e_new, vec(V_LNEG, F), vec(V_LNEB, F))


# ---------------------------------------------------------------------------
# Parameter / structural-matrix setup (host-side glue).
# ---------------------------------------------------------------------------
def _block_diag(block, n_rep):
    a, b = block.shape
    m = np.zeros((n_rep * a, n_rep * b), dtype=np.float32)
    for i in range(n_rep):
        m[i * a:(i + 1) * a, i * b:(i + 1) * b] = block
    return m


def _conv1d_band_matrix(w):
    # w: (H_out, H_in, 3) PyTorch Conv1d weight, padding=1.
    # Returns (F, F) matrix M such that (x_flat @ M)[e, o*D+d] == Conv1d(x)[e, o, d].
    h_out, h_in, kk = w.shape
    m = np.zeros((h_in * D, h_out * D), dtype=np.float32)
    for o in range(h_out):
        for i in range(h_in):
            for d in range(D):
                for k in range(kk):
                    dp = d + k - 1
                    if 0 <= dp < D:
                        m[i * D + dp, o * D + d] = w[o, i, k]
    return m


def build_params(key):
    keys = list(jax.random.split(key, 32))
    kit = iter(keys)

    def w(shape, scale=0.1):
        return scale * jax.random.normal(next(kit), shape, dtype=jnp.float32)

    P = dict(
        wq=w((F, F)), bq=w((F,), 0.02),
        wk=w((F, F)), bk=w((F,), 0.02),
        wv=w((F, F)), bv=w((F,), 0.02),
        wpe=w((F, F)), bpe=w((F,), 0.02),
        ngw1=w((F, F // 2)), ngb1=w((F // 2,), 0.02),
        ngg=jnp.ones((F // 2,), jnp.float32), ngbt=jnp.zeros((F // 2,), jnp.float32),
        ngw2=w((F // 2, F)), ngb2=w((F,), 0.02),
        ccw=w((3 * D, D), 0.2), ccb_raw=w((D,), 0.02),
        ccg_raw=jnp.ones((D,), jnp.float32), ccbt_raw=jnp.zeros((D,), jnp.float32),
        c1w=w((NUM_HEADS, NUM_HEADS, 3), 0.2), c1b_raw=w((NUM_HEADS,), 0.02),
        c2w=w((NUM_HEADS, NUM_HEADS, 3), 0.2), c2b_raw=w((NUM_HEADS,), 0.02),
        fhw1=w((F, 2 * F)), fhb1=w((2 * F,), 0.02),
        fhw2=w((2 * F, F)), fhb2=w((F,), 0.02),
        few1=w((F, 2 * F)), feb1=w((2 * F,), 0.02),
        few2=w((2 * F, F)), feb2=w((F,), 0.02),
        lnhg=jnp.ones((F,), jnp.float32), lnhb=jnp.zeros((F,), jnp.float32),
        lneg=jnp.ones((F,), jnp.float32), lneb=jnp.zeros((F,), jnp.float32),
        coef=jnp.ones((4,), jnp.float32),   # LearnableCoefficient inits to 1.0
    )
    return P


def _pack_params(P):
    """Fuse & pack all parameters into three slabs (host-side numpy)."""
    f = lambda x: np.asarray(x, np.float32)

    ccw = f(P['ccw'])
    cck = _block_diag(ccw[0:D], NUM_HEADS)
    ccq = _block_diag(ccw[D:2 * D], NUM_HEADS)
    cce = _block_diag(ccw[2 * D:3 * D], NUM_HEADS)
    avg_m = _block_diag(np.full((D, D), 1.0 / D, np.float32), NUM_HEADS)

    # Fuse the two Conv1d band matmuls (no nonlinearity between them).
    c1m = _conv1d_band_matrix(f(P['c1w']))
    c2m = _conv1d_band_matrix(f(P['c2w']))
    c1b_t = np.repeat(f(P['c1b_raw']), D)
    c2b_t = np.repeat(f(P['c2b_raw']), D)
    conv_m = (c1m @ c2m).astype(np.float32)
    conv_b = (c1b_t @ c2m + c2b_t).astype(np.float32)

    ccb_t = np.tile(f(P['ccb_raw']), NUM_HEADS)
    ccg_t = np.tile(f(P['ccg_raw']), NUM_HEADS)
    ccbt_t = np.tile(f(P['ccbt_raw']), NUM_HEADS)

    wq, wk, wv, wpe = f(P['wq']), f(P['wk']), f(P['wv']), f(P['wpe'])
    bq, bk, bv, bpe = f(P['bq']), f(P['bk']), f(P['bv']), f(P['bpe'])
    scale = np.float32(1.0 / np.sqrt(D))

    # Fold change_channel into the existing projections (ride the gathers).
    gk_w = wk @ cck
    gq_w = wq @ ccq
    ge_w = wpe @ cce
    eg_b = bk @ cck + bq @ ccq + bpe @ cce + ccb_t

    # Slab 1: all matrices applied to h / e / h_attn / e_attn; every segment
    # starts on a 128-lane boundary so all downstream slices are sub-views.
    w_wide = np.zeros((F, W_WIDE_COLS), np.float32)
    w_wide[:, NB_K:NB_K + F] = wk * scale          # 1/sqrt(D) folded into K
    w_wide[:, NB_V:NB_V + F] = wv
    w_wide[:, NB_GK:NB_GK + F] = gk_w
    w_wide[:, NB_Q:NB_Q + F] = wq
    w_wide[:, NB_GQ:NB_GQ + F] = gq_w
    w_wide[:, NG_OFF:NG_OFF + F // 2] = f(P['ngw1'])
    w_wide[:, EB_PE:EB_PE + F] = wpe
    w_wide[:, EB_GE:EB_GE + F] = ge_w
    w_wide[:, C_FHW1:C_FHW1 + 2 * F] = f(P['fhw1'])
    w_wide[:, C_FEW1:C_FEW1 + 2 * F] = f(P['few1'])

    # Slab 2: remaining (*, F)-output matrices, row offsets multiples of 16.
    w_stack = np.concatenate(
        [f(P['ngw2']), avg_m, conv_m, f(P['fhw2']), f(P['few2'])], axis=0
    ).astype(np.float32)
    assert w_stack.shape == (S_TOTAL, F)

    # Slab 3: bias / gain / LayerNorm vectors, one per row (kept f32).
    vecs = np.zeros((N_VEC_ROWS, 128), np.float32)

    def put(row, v):
        v = np.asarray(v, np.float32).reshape(-1)
        vecs[row, :v.shape[0]] = v

    put(V_BK, bk * scale); put(V_BV, bv); put(V_BQ, bq)
    put(V_BNG1, P['ngb1']); put(V_BPE, bpe); put(V_EGB, eg_b)
    put(V_NGG, P['ngg']); put(V_NGBT, P['ngbt']); put(V_NGB2, P['ngb2'])
    put(V_CCG, ccg_t); put(V_CCBT, ccbt_t); put(V_CONVB, conv_b)
    put(V_FHB1, P['fhb1']); put(V_FHB2, P['fhb2'])
    put(V_FEB1, P['feb1']); put(V_FEB2, P['feb2'])
    put(V_LNHG, P['lnhg']); put(V_LNHB, P['lnhb'])
    put(V_LNEG, P['lneg']); put(V_LNEB, P['lneb'])

    return (jnp.asarray(w_wide, dtype=jnp.bfloat16),
            jnp.asarray(w_stack, dtype=jnp.bfloat16),
            jnp.asarray(vecs, dtype=jnp.float32))


def agt_forward(h, e, src, dst, P):
    # One-hots and the pre-transposed scatter matrix are bf16 (exact for 0/1
    # values, halves their DMA bytes).
    src_oh = jax.nn.one_hot(src, N, dtype=jnp.bfloat16)     # (E, N)
    dst_oh = jax.nn.one_hot(dst, N, dtype=jnp.bfloat16)     # (E, N)
    dst_oh_t = dst_oh.T                                      # (N, E) — host-side transpose
    w_wide, w_stack, vecs = _pack_params(P)

    call = pl.pallas_call(
        _agt_kernel,
        out_shape=jax.ShapeDtypeStruct((N + E, F), jnp.float32),
        in_specs=[pl.BlockSpec(memory_space=pltpu.MemorySpace.VMEM)] * 8
                 + [pl.BlockSpec(memory_space=pltpu.MemorySpace.SMEM)],
        out_specs=pl.BlockSpec(memory_space=pltpu.MemorySpace.VMEM),
    )
    out = call(h, e, src_oh, dst_oh, dst_oh_t, w_wide, w_stack, vecs, P['coef'])
    return out[:N], out[N:]


# ---------------------------------------------------------------------------
# Literal pure-JAX reference (mirrors the PyTorch/DGL code) for verification.
# Uses HIGHEST matmul precision so it serves as the accurate baseline.
# ---------------------------------------------------------------------------
def reference_forward(h, e, src, dst, P):
    hp = jax.lax.Precision.HIGHEST

    def lin(x, w, b):
        return jnp.dot(x, w, precision=hp) + b

    def ln(x, g, b):
        mu = x.mean(-1, keepdims=True)
        var = ((x - mu) ** 2).mean(-1, keepdims=True)
        return (x - mu) / jnp.sqrt(var + LN_EPS) * g + b

    Qh = lin(h, P['wq'], P['bq']).reshape(N, NUM_HEADS, D)
    Kh = lin(h, P['wk'], P['bk']).reshape(N, NUM_HEADS, D)
    Vh = lin(h, P['wv'], P['bv']).reshape(N, NUM_HEADS, D)
    proj_e = lin(e, P['wpe'], P['bpe']).reshape(E, NUM_HEADS, D)
    ng = lin(h, P['ngw1'], P['ngb1'])
    ng = jnp.tanh(ln(ng, P['ngg'], P['ngbt']))
    ng = lin(ng, P['ngw2'], P['ngb2'])
    n_gate = jax.nn.sigmoid(ng).reshape(N, NUM_HEADS, D)

    K_src, Q_dst, V_src = Kh[src], Qh[dst], Vh[src]
    score = (K_src * Q_dst) / np.float32(np.sqrt(D)) * proj_e
    e_attn = score
    eg = jnp.dot(jnp.concatenate([K_src, Q_dst, proj_e], axis=-1), P['ccw'],
                 precision=hp) + P['ccb_raw']
    eg = jnp.tanh(ln(eg, P['ccg_raw'], P['ccbt_raw']))

    def conv(x, w, b):
        y = jax.lax.conv_general_dilated(
            x, w, window_strides=(1,), padding=[(1, 1)],
            dimension_numbers=('NCH', 'OIH', 'NCH'), precision=hp)
        return y + b[None, :, None]

    eg = conv(eg, P['c1w'], P['c1b_raw'])
    eg = conv(eg, P['c2w'], P['c2b_raw'])
    eg = score * jax.nn.sigmoid(eg)
    a = jnp.exp(jnp.clip(eg.sum(-1, keepdims=True), -0.005, 0.005))
    wV = jax.ops.segment_sum(V_src * a, dst, num_segments=N) * n_gate
    z = jax.ops.segment_sum(a, dst, num_segments=N)
    h_attn = (wV / (z + 1e-30)).reshape(N, F)
    e_attn = e_attn.reshape(E, F)

    hf = jax.nn.relu(lin(h_attn, P['fhw1'], P['fhb1']))
    hf = lin(hf, P['fhw2'], P['fhb2'])
    h_new = P['coef'][0] * h + P['coef'][1] * hf
    h_new = ln(h_new, P['lnhg'], P['lnhb'])

    ef = jax.nn.relu(lin(e_attn, P['few1'], P['feb1']))
    ef = lin(ef, P['few2'], P['feb2'])
    e_new = P['coef'][2] * e + P['coef'][1] * ef
    e_new = ln(e_new, P['lneg'], P['lneb'])
    return h_new, e_new


if __name__ == "__main__":
    key = jax.random.PRNGKey(0)
    k_h, k_e, k_src, k_dst, k_param = jax.random.split(key, 5)
    h = jax.random.normal(k_h, (N, IN_DIM), dtype=jnp.float32)
    e = jax.random.normal(k_e, (E, IN_DIM), dtype=jnp.float32)
    src = jax.random.randint(k_src, (E,), 0, N)
    dst = jax.random.randint(k_dst, (E,), 0, N)

    P = build_params(k_param)

    h_out, e_out = agt_forward(h, e, src, dst, P)
    jax.block_until_ready((h_out, e_out))

    h_ref, e_ref = reference_forward(h, e, src, dst, P)
    np.testing.assert_allclose(np.asarray(h_out), np.asarray(h_ref), rtol=2e-2, atol=2e-2)
    np.testing.assert_allclose(np.asarray(e_out), np.asarray(e_ref), rtol=2e-2, atol=2e-2)

    print("KERNEL_OK")
</pallas_src>

<mosaic_0001>
module attributes {stable_mosaic.version = 11 : i64} {
  func.func @_agt_kernel(%arg0: memref<16x32xf32, #tpu.memory_space<vmem>>, %arg1: memref<32x32xf32, #tpu.memory_space<vmem>>, %arg2: memref<32x16xbf16, #tpu.memory_space<vmem>>, %arg3: memref<32x16xbf16, #tpu.memory_space<vmem>>, %arg4: memref<16x32xbf16, #tpu.memory_space<vmem>>, %arg5: memref<32x1280xbf16, #tpu.memory_space<vmem>>, %arg6: memref<208x32xbf16, #tpu.memory_space<vmem>>, %arg7: memref<24x128xf32, #tpu.memory_space<vmem>>, %arg8: memref<4xf32, #tpu.memory_space<smem>>, %arg9: memref<48x32xf32, #tpu.memory_space<vmem>>) attributes {dimension_semantics = [], scalar_prefetch = 0 : i64, scratch_operands = 0 : i64, tpu.core_type = #tpu.core_type<tc>} {
    %c0 = arith.constant 0 : index
    %c0_0 = arith.constant 0 : index
    %0 = vector.load %arg7[%c0, %c0_0] : memref<24x128xf32, #tpu.memory_space<vmem>>, vector<24x128xf32>
    %c0_1 = arith.constant 0 : index
    %c0_2 = arith.constant 0 : index
    %1 = vector.load %arg0[%c0_1, %c0_2] : memref<16x32xf32, #tpu.memory_space<vmem>>, vector<16x32xf32>
    %c0_3 = arith.constant 0 : index
    %c0_4 = arith.constant 0 : index
    %2 = vector.load %arg1[%c0_3, %c0_4] : memref<32x32xf32, #tpu.memory_space<vmem>>, vector<32x32xf32>
    %c0_5 = arith.constant 0 : index
    %c0_6 = arith.constant 0 : index
    %3 = vector.load %arg5[%c0_5, %c0_6] : memref<32x1280xbf16, #tpu.memory_space<vmem>>, vector<32x768xbf16>
    %4 = arith.truncf %1 : vector<16x32xf32> to vector<16x32xbf16>
    %cst = arith.constant dense<0.000000e+00> : vector<16x768xf32>
    %5 = tpu.matmul %4, %3, %cst {dimension_numbers = #tpu.dot_dimension_numbers<[1], [0], [0], [1], [0, 0, 1, 1], [], []>} : vector<16x32xbf16>, vector<32x768xbf16>, vector<16x768xf32> -> vector<16x768xf32>
    %c0_7 = arith.constant 0 : index
    %c768 = arith.constant 768 : index
    %6 = vector.load %arg5[%c0_7, %c768] : memref<32x1280xbf16, #tpu.memory_space<vmem>>, vector<32x256xbf16>
    %7 = arith.truncf %2 : vector<32x32xf32> to vector<32x32xbf16>
    %cst_8 = arith.constant dense<0.000000e+00> : vector<32x256xf32>
    %8 = tpu.matmul %7, %6, %cst_8 {dimension_numbers = #tpu.dot_dimension_numbers<[1], [0], [0], [1], [0, 0, 1, 1], [], []>} : vector<32x32xbf16>, vector<32x256xbf16>, vector<32x256xf32> -> vector<32x256xf32>
    %c0_9 = arith.constant 0 : index
    %c0_10 = arith.constant 0 : index
    %9 = vector.load %arg2[%c0_9, %c0_10] : memref<32x16xbf16, #tpu.memory_space<vmem>>, vector<32x16xbf16>
    %10 = vector.extract_strided_slice %5 {offsets = [0, 0], sizes = [16, 384], strides = [1, 1]} : vector<16x768xf32> to vector<16x384xf32>
    %11 = arith.truncf %10 : vector<16x384xf32> to vector<16x384xbf16>
    %cst_11 = arith.constant dense<0.000000e+00> : vector<32x384xf32>
    %12 = tpu.matmul %9, %11, %cst_11 {dimension_numbers = #tpu.dot_dimension_numbers<[1], [0], [0], [1], [0, 0, 1, 1], [], []>} : vector<32x16xbf16>, vector<16x384xbf16>, vector<32x384xf32> -> vector<32x384xf32>
    %c0_12 = arith.constant 0 : index
    %c0_13 = arith.constant 0 : index
    %13 = vector.load %arg3[%c0_12, %c0_13] : memref<32x16xbf16, #tpu.memory_space<vmem>>, vector<32x16xbf16>
    %14 = vector.extract_strided_slice %5 {offsets = [0, 384], sizes = [16, 256], strides = [1, 1]} : vector<16x768xf32> to vector<16x256xf32>
    %15 = arith.truncf %14 : vector<16x256xf32> to vector<16x256xbf16>
    %cst_14 = arith.constant dense<0.000000e+00> : vector<32x256xf32>
    %16 = tpu.matmul %13, %15, %cst_14 {dimension_numbers = #tpu.dot_dimension_numbers<[1], [0], [0], [1], [0, 0, 1, 1], [], []>} : vector<32x16xbf16>, vector<16x256xbf16>, vector<32x256xf32> -> vector<32x256xf32>
    %17 = vector.extract_strided_slice %12 {offsets = [0, 0], sizes = [32, 32], strides = [1, 1]} : vector<32x384xf32> to vector<32x32xf32>
    %18 = vector.extract_strided_slice %0 {offsets = [0, 0], sizes = [1, 32], strides = [1, 1]} : vector<24x128xf32> to vector<1x32xf32>
    %19 = vector.broadcast %18 : vector<1x32xf32> to vector<32x32xf32>
    %20 = arith.addf %17, %19 : vector<32x32xf32>
    %21 = vector.extract_strided_slice %12 {offsets = [0, 128], sizes = [32, 32], strides = [1, 1]} : vector<32x384xf32> to vector<32x32xf32>
    %22 = vector.extract_strided_slice %0 {offsets = [1, 0], sizes = [1, 32], strides = [1, 1]} : vector<24x128xf32> to vector<1x32xf32>
    %23 = vector.broadcast %22 : vector<1x32xf32> to vector<32x32xf32>
    %24 = arith.addf %21, %23 : vector<32x32xf32>
    %25 = vector.extract_strided_slice %12 {offsets = [0, 256], sizes = [32, 32], strides = [1, 1]} : vector<32x384xf32> to vector<32x32xf32>
    %26 = vector.extract_strided_slice %16 {offsets = [0, 0], sizes = [32, 32], strides = [1, 1]} : vector<32x256xf32> to vector<32x32xf32>
    %27 = vector.extract_strided_slice %0 {offsets = [2, 0], sizes = [1, 32], strides = [1, 1]} : vector<24x128xf32> to vector<1x32xf32>
    %28 = vector.broadcast %27 : vector<1x32xf32> to vector<32x32xf32>
    %29 = arith.addf %26, %28 : vector<32x32xf32>
    %30 = vector.extract_strided_slice %16 {offsets = [0, 128], sizes = [32, 32], strides = [1, 1]} : vector<32x256xf32> to vector<32x32xf32>
    %31 = vector.extract_strided_slice %8 {offsets = [0, 0], sizes = [32, 32], strides = [1, 1]} : vector<32x256xf32> to vector<32x32xf32>
    %32 = vector.extract_strided_slice %0 {offsets = [4, 0], sizes = [1, 32], strides = [1, 1]} : vector<24x128xf32> to vector<1x32xf32>
    %33 = vector.broadcast %32 : vector<1x32xf32> to vector<32x32xf32>
    %34 = arith.addf %31, %33 : vector<32x32xf32>
    %35 = vector.extract_strided_slice %8 {offsets = [0, 128], sizes = [32, 32], strides = [1, 1]} : vector<32x256xf32> to vector<32x32xf32>
    %36 = vector.extract_strided_slice %5 {offsets = [0, 640], sizes = [16, 16], strides = [1, 1]} : vector<16x768xf32> to vector<16x16xf32>
    %37 = vector.extract_strided_slice %0 {offsets = [3, 0], sizes = [1, 16], strides = [1, 1]} : vector<24x128xf32> to vector<1x16xf32>
    %38 = vector.broadcast %37 : vector<1x16xf32> to vector<16x16xf32>
    %39 = arith.addf %36, %38 : vector<16x16xf32>
    %40 = vector.extract_strided_slice %0 {offsets = [6, 0], sizes = [1, 16], strides = [1, 1]} : vector<24x128xf32> to vector<1x16xf32>
    %41 = vector.extract_strided_slice %0 {offsets = [7, 0], sizes = [1, 16], strides = [1, 1]} : vector<24x128xf32> to vector<1x16xf32>
    %cst_15 = arith.constant dense<0.000000e+00> : vector<16xf32>
    %42 = vector.multi_reduction <add>, %39, %cst_15 [1] : vector<16x16xf32> to vector<16xf32>
    %43 = vector.shape_cast %42 : vector<16xf32> to vector<16x1xf32>
    %cst_16 = arith.constant 1.600000e+01 : f32
    %44 = vector.broadcast %cst_16 : f32 to vector<16x1xf32>
    %45 = arith.divf %43, %44 : vector<16x1xf32>
    %46 = vector.broadcast %45 : vector<16x1xf32> to vector<16x16xf32>
    %47 = arith.subf %39, %46 : vector<16x16xf32>
    %48 = arith.mulf %47, %47 : vector<16x16xf32>
    %cst_17 = arith.constant dense<0.000000e+00> : vector<16xf32>
    %49 = vector.multi_reduction <add>, %48, %cst_17 [1] : vector<16x16xf32> to vector<16xf32>
    %50 = vector.shape_cast %49 : vector<16xf32> to vector<16x1xf32>
    %cst_18 = arith.constant 1.600000e+01 : f32
    %51 = vector.broadcast %cst_18 : f32 to vector<16x1xf32>
    %52 = arith.divf %50, %51 : vector<16x1xf32>
    %53 = vector.broadcast %45 : vector<16x1xf32> to vector<16x16xf32>
    %54 = arith.subf %39, %53 : vector<16x16xf32>
    %cst_19 = arith.constant 9.99999974E-6 : f32
    %55 = vector.broadcast %cst_19 : f32 to vector<16x1xf32>
    %56 = arith.addf %52, %55 : vector<16x1xf32>
    %57 = math.rsqrt %56 : vector<16x1xf32>
    %58 = vector.broadcast %57 : vector<16x1xf32> to vector<16x16xf32>
    %59 = arith.mulf %54, %58 : vector<16x16xf32>
    %60 = vector.broadcast %40 : vector<1x16xf32> to vector<16x16xf32>
    %61 = arith.mulf %59, %60 : vector<16x16xf32>
    %62 = vector.broadcast %41 : vector<1x16xf32> to vector<16x16xf32>
    %63 = arith.addf %61, %62 : vector<16x16xf32>
    %64 = math.tanh %63 : vector<16x16xf32>
    %c0_20 = arith.constant 0 : index
    %c0_21 = arith.constant 0 : index
    %65 = vector.load %arg6[%c0_20, %c0_21] : memref<208x32xbf16, #tpu.memory_space<vmem>>, vector<16x32xbf16>
    %66 = arith.truncf %64 : vector<16x16xf32> to vector<16x16xbf16>
    %cst_22 = arith.constant dense<0.000000e+00> : vector<16x32xf32>
    %67 = tpu.matmul %66, %65, %cst_22 {dimension_numbers = #tpu.dot_dimension_numbers<[1], [0], [0], [1], [0, 0, 1, 1], [], []>} : vector<16x16xbf16>, vector<16x32xbf16>, vector<16x32xf32> -> vector<16x32xf32>
    %68 = vector.extract_strided_slice %0 {offsets = [8, 0], sizes = [1, 32], strides = [1, 1]} : vector<24x128xf32> to vector<1x32xf32>
    %69 = vector.broadcast %68 : vector<1x32xf32> to vector<16x32xf32>
    %70 = arith.addf %67, %69 : vector<16x32xf32>
    %cst_23 = arith.constant 5.000000e-01 : f32
    %71 = vector.broadcast %cst_23 : f32 to vector<16x32xf32>
    %72 = arith.mulf %71, %70 : vector<16x32xf32>
    %73 = math.tanh %72 : vector<16x32xf32>
    %cst_24 = arith.constant 5.000000e-01 : f32
    %74 = vector.broadcast %cst_24 : f32 to vector<16x32xf32>
    %75 = arith.mulf %74, %73 : vector<16x32xf32>
    %cst_25 = arith.constant 5.000000e-01 : f32
    %76 = vector.broadcast %cst_25 : f32 to vector<16x32xf32>
    %77 = arith.addf %75, %76 : vector<16x32xf32>
    %78 = arith.mulf %20, %29 : vector<32x32xf32>
    %79 = arith.mulf %78, %34 : vector<32x32xf32>
    %80 = arith.addf %25, %30 : vector<32x32xf32>
    %81 = arith.addf %80, %35 : vector<32x32xf32>
    %82 = vector.extract_strided_slice %0 {offsets = [5, 0], sizes = [1, 32], strides = [1, 1]} : vector<24x128xf32> to vector<1x32xf32>
    %83 = vector.broadcast %82 : vector<1x32xf32> to vector<32x32xf32>
    %84 = arith.addf %81, %83 : vector<32x32xf32>
    %c16 = arith.constant 16 : index
    %c0_26 = arith.constant 0 : index
    %85 = vector.load %arg6[%c16, %c0_26] : memref<208x32xbf16, #tpu.memory_space<vmem>>, vector<32x32xbf16>
    %86 = arith.truncf %84 : vector<32x32xf32> to vector<32x32xbf16>
    %cst_27 = arith.constant dense<0.000000e+00> : vector<32x32xf32>
    %87 = tpu.matmul %86, %85, %cst_27 {dimension_numbers = #tpu.dot_dimension_numbers<[1], [0], [0], [1], [0, 0, 1, 1], [], []>} : vector<32x32xbf16>, vector<32x32xbf16>, vector<32x32xf32> -> vector<32x32xf32>
    %88 = arith.mulf %84, %84 : vector<32x32xf32>
    %89 = arith.truncf %88 : vector<32x32xf32> to vector<32x32xbf16>
    %cst_28 = arith.constant dense<0.000000e+00> : vector<32x32xf32>
    %90 = tpu.matmul %89, %85, %cst_28 {dimension_numbers = #tpu.dot_dimension_numbers<[1], [0], [0], [1], [0, 0, 1, 1], [], []>} : vector<32x32xbf16>, vector<32x32xbf16>, vector<32x32xf32> -> vector<32x32xf32>
    %91 = arith.mulf %87, %87 : vector<32x32xf32>
    %92 = arith.subf %90, %91 : vector<32x32xf32>
    %cst_29 = arith.constant 0.000000e+00 : f32
    %93 = vector.broadcast %cst_29 : f32 to vector<32x32xf32>
    %94 = arith.maximumf %92, %93 : vector<32x32xf32>
    %95 = arith.subf %84, %87 : vector<32x32xf32>
    %cst_30 = arith.constant 9.99999974E-6 : f32
    %96 = vector.broadcast %cst_30 : f32 to vector<32x32xf32>
    %97 = arith.addf %94, %96 : vector<32x32xf32>
    %98 = math.rsqrt %97 : vector<32x32xf32>
    %99 = arith.mulf %95, %98 : vector<32x32xf32>
    %100 = vector.extract_strided_slice %0 {offsets = [9, 0], sizes = [1, 32], strides = [1, 1]} : vector<24x128xf32> to vector<1x32xf32>
    %101 = vector.broadcast %100 : vector<1x32xf32> to vector<32x32xf32>
    %102 = arith.mulf %99, %101 : vector<32x32xf32>
    %103 = vector.extract_strided_slice %0 {offsets = [10, 0], sizes = [1, 32], strides = [1, 1]} : vector<24x128xf32> to vector<1x32xf32>
    %104 = vector.broadcast %103 : vector<1x32xf32> to vector<32x32xf32>
    %105 = arith.addf %102, %104 : vector<32x32xf32>
    %106 = math.tanh %105 : vector<32x32xf32>
    %c48 = arith.constant 48 : index
    %c0_31 = arith.constant 0 : index
    %107 = vector.load %arg6[%c48, %c0_31] : memref<208x32xbf16, #tpu.memory_space<vmem>>, vector<32x32xbf16>
    %108 = arith.truncf %106 : vector<32x32xf32> to vector<32x32xbf16>
    %cst_32 = arith.constant dense<0.000000e+00> : vector<32x32xf32>
    %109 = tpu.matmul %108, %107, %cst_32 {dimension_numbers = #tpu.dot_dimension_numbers<[1], [0], [0], [1], [0, 0, 1, 1], [], []>} : vector<32x32xbf16>, vector<32x32xbf16>, vector<32x32xf32> -> vector<32x32xf32>
    %110 = vector.extract_strided_slice %0 {offsets = [11, 0], sizes = [1, 32], strides = [1, 1]} : vector<24x128xf32> to vector<1x32xf32>
    %111 = vector.broadcast %110 : vector<1x32xf32> to vector<32x32xf32>
    %112 = arith.addf %109, %111 : vector<32x32xf32>
    %cst_33 = arith.constant 5.000000e-01 : f32
    %113 = vector.broadcast %cst_33 : f32 to vector<32x32xf32>
    %114 = arith.mulf %113, %112 : vector<32x32xf32>
    %115 = math.tanh %114 : vector<32x32xf32>
    %cst_34 = arith.constant 5.000000e-01 : f32
    %116 = vector.broadcast %cst_34 : f32 to vector<32x32xf32>
    %117 = arith.mulf %116, %115 : vector<32x32xf32>
    %cst_35 = arith.constant 5.000000e-01 : f32
    %118 = vector.broadcast %cst_35 : f32 to vector<32x32xf32>
    %119 = arith.addf %117, %118 : vector<32x32xf32>
    %120 = arith.mulf %79, %119 : vector<32x32xf32>
    %121 = arith.truncf %120 : vector<32x32xf32> to vector<32x32xbf16>
    %cst_36 = arith.constant dense<0.000000e+00> : vector<32x32xf32>
    %122 = tpu.matmul %121, %85, %cst_36 {dimension_numbers = #tpu.dot_dimension_numbers<[1], [0], [0], [1], [0, 0, 1, 1], [], []>} : vector<32x32xbf16>, vector<32x32xbf16>, vector<32x32xf32> -> vector<32x32xf32>
    %cst_37 = arith.constant 8.000000e+00 : f32
    %123 = vector.broadcast %cst_37 : f32 to vector<32x32xf32>
    %124 = arith.mulf %122, %123 : vector<32x32xf32>
    %cst_38 = arith.constant -5.000000e-03 : f32
    %cst_39 = arith.constant 5.000000e-03 : f32
    %125 = vector.broadcast %cst_38 : f32 to vector<32x32xf32>
    %126 = arith.maximumf %125, %124 : vector<32x32xf32>
    %127 = vector.broadcast %cst_39 : f32 to vector<32x32xf32>
    %128 = arith.minimumf %127, %126 : vector<32x32xf32>
    %129 = math.exp %128 : vector<32x32xf32>
    %c0_40 = arith.constant 0 : index
    %c0_41 = arith.constant 0 : index
    %130 = vector.load %arg4[%c0_40, %c0_41] : memref<16x32xbf16, #tpu.memory_space<vmem>>, vector<16x32xbf16>
    %131 = arith.mulf %24, %129 : vector<32x32xf32>
    %132 = arith.truncf %131 : vector<32x32xf32> to vector<32x32xbf16>
    %cst_42 = arith.constant dense<0.000000e+00> : vector<16x32xf32>
    %133 = tpu.matmul %130, %132, %cst_42 {dimension_numbers = #tpu.dot_dimension_numbers<[1], [0], [0], [1], [0, 0, 1, 1], [], []>} : vector<16x32xbf16>, vector<32x32xbf16>, vector<16x32xf32> -> vector<16x32xf32>
    %134 = arith.mulf %133, %77 : vector<16x32xf32>
    %135 = arith.truncf %129 : vector<32x32xf32> to vector<32x32xbf16>
    %cst_43 = arith.constant dense<0.000000e+00> : vector<16x32xf32>
    %136 = tpu.matmul %130, %135, %cst_43 {dimension_numbers = #tpu.dot_dimension_numbers<[1], [0], [0], [1], [0, 0, 1, 1], [], []>} : vector<16x32xbf16>, vector<32x32xbf16>, vector<16x32xf32> -> vector<16x32xf32>
    %cst_44 = arith.constant 1.000000e-30 : f32
    %137 = vector.broadcast %cst_44 : f32 to vector<16x32xf32>
    %138 = arith.addf %136, %137 : vector<16x32xf32>
    %139 = arith.divf %134, %138 : vector<16x32xf32>
    %c0_45 = arith.constant 0 : index
    %140 = memref.load %arg8[%c0_45] : memref<4xf32, #tpu.memory_space<smem>>
    %c1 = arith.constant 1 : index
    %141 = memref.load %arg8[%c1] : memref<4xf32, #tpu.memory_space<smem>>
    %c2 = arith.constant 2 : index
    %142 = memref.load %arg8[%c2] : memref<4xf32, #tpu.memory_space<smem>>
    %c0_46 = arith.constant 0 : index
    %c1024 = arith.constant 1024 : index
    %143 = vector.load %arg5[%c0_46, %c1024] : memref<32x1280xbf16, #tpu.memory_space<vmem>>, vector<32x64xbf16>
    %144 = arith.truncf %139 : vector<16x32xf32> to vector<16x32xbf16>
    %cst_47 = arith.constant dense<0.000000e+00> : vector<16x64xf32>
    %145 = tpu.matmul %144, %143, %cst_47 {dimension_numbers = #tpu.dot_dimension_numbers<[1], [0], [0], [1], [0, 0, 1, 1], [], []>} : vector<16x32xbf16>, vector<32x64xbf16>, vector<16x64xf32> -> vector<16x64xf32>
    %146 = vector.extract_strided_slice %0 {offsets = [12, 0], sizes = [1, 64], strides = [1, 1]} : vector<24x128xf32> to vector<1x64xf32>
    %147 = vector.broadcast %146 : vector<1x64xf32> to vector<16x64xf32>
    %148 = arith.addf %145, %147 : vector<16x64xf32>
    %cst_48 = arith.constant 0.000000e+00 : f32
    %149 = vector.broadcast %cst_48 : f32 to vector<16x64xf32>
    %150 = arith.maximumf %148, %149 : vector<16x64xf32>
    %c80 = arith.constant 80 : index
    %c0_49 = arith.constant 0 : index
    %151 = vector.load %arg6[%c80, %c0_49] : memref<208x32xbf16, #tpu.memory_space<vmem>>, vector<64x32xbf16>
    %152 = arith.truncf %150 : vector<16x64xf32> to vector<16x64xbf16>
    %cst_50 = arith.constant dense<0.000000e+00> : vector<16x32xf32>
    %153 = tpu.matmul %152, %151, %cst_50 {dimension_numbers = #tpu.dot_dimension_numbers<[1], [0], [0], [1], [0, 0, 1, 1], [], []>} : vector<16x64xbf16>, vector<64x32xbf16>, vector<16x32xf32> -> vector<16x32xf32>
    %154 = vector.extract_strided_slice %0 {offsets = [13, 0], sizes = [1, 32], strides = [1, 1]} : vector<24x128xf32> to vector<1x32xf32>
    %155 = vector.broadcast %154 : vector<1x32xf32> to vector<16x32xf32>
    %156 = arith.addf %153, %155 : vector<16x32xf32>
    %157 = vector.broadcast %140 : f32 to vector<16x32xf32>
    %158 = arith.mulf %157, %1 : vector<16x32xf32>
    %159 = vector.broadcast %141 : f32 to vector<16x32xf32>
    %160 = arith.mulf %159, %156 : vector<16x32xf32>
    %161 = arith.addf %158, %160 : vector<16x32xf32>
    %162 = vector.extract_strided_slice %0 {offsets = [16, 0], sizes = [1, 32], strides = [1, 1]} : vector<24x128xf32> to vector<1x32xf32>
    %163 = vector.extract_strided_slice %0 {offsets = [17, 0], sizes = [1, 32], strides = [1, 1]} : vector<24x128xf32> to vector<1x32xf32>
    %cst_51 = arith.constant dense<0.000000e+00> : vector<16xf32>
    %164 = vector.multi_reduction <add>, %161, %cst_51 [1] : vector<16x32xf32> to vector<16xf32>
    %165 = vector.shape_cast %164 : vector<16xf32> to vector<16x1xf32>
    %cst_52 = arith.constant 3.200000e+01 : f32
    %166 = vector.broadcast %cst_52 : f32 to vector<16x1xf32>
    %167 = arith.divf %165, %166 : vector<16x1xf32>
    %168 = vector.broadcast %167 : vector<16x1xf32> to vector<16x32xf32>
    %169 = arith.subf %161, %168 : vector<16x32xf32>
    %170 = arith.mulf %169, %169 : vector<16x32xf32>
    %cst_53 = arith.constant dense<0.000000e+00> : vector<16xf32>
    %171 = vector.multi_reduction <add>, %170, %cst_53 [1] : vector<16x32xf32> to vector<16xf32>
    %172 = vector.shape_cast %171 : vector<16xf32> to vector<16x1xf32>
    %cst_54 = arith.constant 3.200000e+01 : f32
    %173 = vector.broadcast %cst_54 : f32 to vector<16x1xf32>
    %174 = arith.divf %172, %173 : vector<16x1xf32>
    %175 = vector.broadcast %167 : vector<16x1xf32> to vector<16x32xf32>
    %176 = arith.subf %161, %175 : vector<16x32xf32>
    %cst_55 = arith.constant 9.99999974E-6 : f32
    %177 = vector.broadcast %cst_55 : f32 to vector<16x1xf32>
    %178 = arith.addf %174, %177 : vector<16x1xf32>
    %179 = math.rsqrt %178 : vector<16x1xf32>
    %180 = vector.broadcast %179 : vector<16x1xf32> to vector<16x32xf32>
    %181 = arith.mulf %176, %180 : vector<16x32xf32>
    %182 = vector.broadcast %162 : vector<1x32xf32> to vector<16x32xf32>
    %183 = arith.mulf %181, %182 : vector<16x32xf32>
    %184 = vector.broadcast %163 : vector<1x32xf32> to vector<16x32xf32>
    %185 = arith.addf %183, %184 : vector<16x32xf32>
    %c0_56 = arith.constant 0 : index
    %c0_57 = arith.constant 0 : index
    %186 = vector.load %arg9[%c0_56, %c0_57] : memref<48x32xf32, #tpu.memory_space<vmem>>, vector<16x32xf32>
    tpu.vector_store %arg9[%c0_56, %c0_57], %185 {strides = array<i32>} : memref<48x32xf32, #tpu.memory_space<vmem>>, vector<16x32xf32>,
    %c0_58 = arith.constant 0 : index
    %c1152 = arith.constant 1152 : index
    %187 = vector.load %arg5[%c0_58, %c1152] : memref<32x1280xbf16, #tpu.memory_space<vmem>>, vector<32x64xbf16>
    %188 = arith.truncf %79 : vector<32x32xf32> to vector<32x32xbf16>
    %cst_59 = arith.constant dense<0.000000e+00> : vector<32x64xf32>
    %189 = tpu.matmul %188, %187, %cst_59 {dimension_numbers = #tpu.dot_dimension_numbers<[1], [0], [0], [1], [0, 0, 1, 1], [], []>} : vector<32x32xbf16>, vector<32x64xbf16>, vector<32x64xf32> -> vector<32x64xf32>
    %190 = vector.extract_strided_slice %0 {offsets = [14, 0], sizes = [1, 64], strides = [1, 1]} : vector<24x128xf32> to vector<1x64xf32>
    %191 = vector.broadcast %190 : vector<1x64xf32> to vector<32x64xf32>
    %192 = arith.addf %189, %191 : vector<32x64xf32>
    %cst_60 = arith.constant 0.000000e+00 : f32
    %193 = vector.broadcast %cst_60 : f32 to vector<32x64xf32>
    %194 = arith.maximumf %192, %193 : vector<32x64xf32>
    %c144 = arith.constant 144 : index
    %c0_61 = arith.constant 0 : index
    %195 = vector.load %arg6[%c144, %c0_61] : memref<208x32xbf16, #tpu.memory_space<vmem>>, vector<64x32xbf16>
    %196 = arith.truncf %194 : vector<32x64xf32> to vector<32x64xbf16>
    %cst_62 = arith.constant dense<0.000000e+00> : vector<32x32xf32>
    %197 = tpu.matmul %196, %195, %cst_62 {dimension_numbers = #tpu.dot_dimension_numbers<[1], [0], [0], [1], [0, 0, 1, 1], [], []>} : vector<32x64xbf16>, vector<64x32xbf16>, vector<32x32xf32> -> vector<32x32xf32>
    %198 = vector.extract_strided_slice %0 {offsets = [15, 0], sizes = [1, 32], strides = [1, 1]} : vector<24x128xf32> to vector<1x32xf32>
    %199 = vector.broadcast %198 : vector<1x32xf32> to vector<32x32xf32>
    %200 = arith.addf %197, %199 : vector<32x32xf32>
    %201 = vector.broadcast %142 : f32 to vector<32x32xf32>
    %202 = arith.mulf %201, %2 : vector<32x32xf32>
    %203 = vector.broadcast %141 : f32 to vector<32x32xf32>
    %204 = arith.mulf %203, %200 : vector<32x32xf32>
    %205 = arith.addf %202, %204 : vector<32x32xf32>
    %206 = vector.extract_strided_slice %0 {offsets = [18, 0], sizes = [1, 32], strides = [1, 1]} : vector<24x128xf32> to vector<1x32xf32>
    %207 = vector.extract_strided_slice %0 {offsets = [19, 0], sizes = [1, 32], strides = [1, 1]} : vector<24x128xf32> to vector<1x32xf32>
    %cst_63 = arith.constant dense<0.000000e+00> : vector<32xf32>
    %208 = vector.multi_reduction <add>, %205, %cst_63 [1] : vector<32x32xf32> to vector<32xf32>
    %209 = vector.shape_cast %208 : vector<32xf32> to vector<32x1xf32>
    %cst_64 = arith.constant 3.200000e+01 : f32
    %210 = vector.broadcast %cst_64 : f32 to vector<32x1xf32>
    %211 = arith.divf %209, %210 : vector<32x1xf32>
    %212 = vector.broadcast %211 : vector<32x1xf32> to vector<32x32xf32>
    %213 = arith.subf %205, %212 : vector<32x32xf32>
    %214 = arith.mulf %213, %213 : vector<32x32xf32>
    %cst_65 = arith.constant dense<0.000000e+00> : vector<32xf32>
    %215 = vector.multi_reduction <add>, %214, %cst_65 [1] : vector<32x32xf32> to vector<32xf32>
    %216 = vector.shape_cast %215 : vector<32xf32> to vector<32x1xf32>
    %cst_66 = arith.constant 3.200000e+01 : f32
    %217 = vector.broadcast %cst_66 : f32 to vector<32x1xf32>
    %218 = arith.divf %216, %217 : vector<32x1xf32>
    %219 = vector.broadcast %211 : vector<32x1xf32> to vector<32x32xf32>
    %220 = arith.subf %205, %219 : vector<32x32xf32>
    %cst_67 = arith.constant 9.99999974E-6 : f32
    %221 = vector.broadcast %cst_67 : f32 to vector<32x1xf32>
    %222 = arith.addf %218, %221 : vector<32x1xf32>
    %223 = math.rsqrt %222 : vector<32x1xf32>
    %224 = vector.broadcast %223 : vector<32x1xf32> to vector<32x32xf32>
    %225 = arith.mulf %220, %224 : vector<32x32xf32>
    %226 = vector.broadcast %206 : vector<1x32xf32> to vector<32x32xf32>
    %227 = arith.mulf %225, %226 : vector<32x32xf32>
    %228 = vector.broadcast %207 : vector<1x32xf32> to vector<32x32xf32>
    %229 = arith.addf %227, %228 : vector<32x32xf32>
    %c16_68 = arith.constant 16 : index
    %c0_69 = arith.constant 0 : index
    %230 = vector.load %arg9[%c16_68, %c0_69] : memref<48x32xf32, #tpu.memory_space<vmem>>, vector<32x32xf32>
    tpu.vector_store %arg9[%c16_68, %c0_69], %229 {strides = array<i32>} : memref<48x32xf32, #tpu.memory_space<vmem>>, vector<32x32xf32>,
    return
  }
}

</mosaic_0001>

<bundles_post_ra>
// kernel: tpu_custom_call.1
= control target key start
LH: loop header
LB: loop body
LE: loop exit
PB: predicated region body
PF: predicated region fallthrough
CT: control target
= control target key end

     0   :  { %14 = vsyncpa [#allocation3], 0  ;;  %s2604_s0 = inlined_call_operand.hbm [shape: f32[16,32], index: 0, kind: input, shape index: {}]   ;;  %s2605_s1 = inlined_call_operand.hbm [shape: f32[32,32], index: 1, kind: input, shape index: {}]   ;;  %s2606_s2 = inlined_call_operand.vmem [shape: bf16[32,16], index: 2, kind: input, shape index: {}]   ;;  %s2607_s3 = inlined_call_operand.vmem [shape: bf16[32,16], index: 3, kind: input, shape index: {}]   ;;  %s2608_s4 = inlined_call_operand.vmem [shape: bf16[16,32], index: 4, kind: input, shape index: {}]   ;;  %s2609_s5 = inlined_call_operand.vmem [shape: bf16[32,1280], index: 5, kind: input, shape index: {}]   ;;  %s2610_s6 = inlined_call_operand.vmem [shape: bf16[208,32], index: 6, kind: input, shape index: {}]   ;;  %s2611_s7 = inlined_call_operand.hbm [shape: f32[24,128], index: 7, kind: input, shape index: {}]   ;;  %s2612_s8 = inlined_call_operand.vmem [shape: f32[4], index: 8, kind: input, shape index: {}]   ;;  %s2613_s9 = inlined_call_operand.vmem [shape: f32[48,32], index: 9, kind: output, shape index: {}]  }
   0x1   :  { %15 = vsyncpa [#allocation6], 0 }
   0x2   :  { %16 = vsyncpa [#allocation4], 0  ;;  %s2103_s30 = smov [#allocation5]   ;;  %s2104_s11 = smov [#allocation2]  }
   0x3   :  { %s34_s10 = sshll.u32 %s2103_s30, 4  ;;  %s22_s12 = sshll.u32 %s2104_s11, 4  ;;  %s35_s10 = int_to_ptr.vmem [resolvable:$true] %s34_s10  ;;  %s2162_s12 = int_to_ptr.vmem [resolvable:$true] %s22_s12 }
   0x4   :  { %s2019_s15 = scalar_lea.hbm %s2605_s1, 512 }
   0x5   :  { %p2020_p0 = scmp.ne.s32.totalorder %s2605_s1, %s2019_s15  ;;  %p2023_p1 = scmp.lt.u32.totalorder %s2019_s15, %s2605_s1 }
   0x7   :  { %p2025_p2 = pnand %p2023_p1, %p2020_p0 }
   0x9   :  { %2028 = shalt.err (!%p2025_p2)
}
   0xa   :  { %s2029_s20 = scalar_lea.vmem %s35_s10, 512  ;;  %p2034_p4 = scmp.lt.s32.totalorder %s35_s10, %s35_s10 }
   0xb   :  { %p2030_p3 = scmp.ne.s32.totalorder %s35_s10, %s2029_s20  ;;  %p2035_p5 = scmp.lt.s32.totalorder %s2029_s20, %s2029_s20 }
   0xd   :  { %p2036_p6 = por %p2035_p5, %p2034_p4 }
   0xf   :  { %p2037_p7 = pnand %p2036_p6, %p2030_p3 }
  0x11   :  { %2040 = shalt.err (!%p2037_p7)
}
  0x12   :  { %s2105_s21 = smov 128   ;;  %s2106_s22 = smov 8  }
  0x13   :  { %40 = dma.hbm_to_vmem [thread:$0]  %s2605_s1, 512, %s35_s10, [#allocation6], %s2105_s21, %s2105_s21, %s2106_s22  }
  0x14   :  { %s2041_s27 = scalar_lea.hbm %s2604_s0, 256 }
  0x15   :  { %p2042_p8 = scmp.ne.s32.totalorder %s2604_s0, %s2041_s27  ;;  %p2045_p9 = scmp.lt.u32.totalorder %s2041_s27, %s2604_s0 }
  0x17   :  { %p2047_p10 = pnand %p2045_p9, %p2042_p8 }
  0x19   :  { %2050 = shalt.err (!%p2047_p10)
}
  0x1a   :  { %s2051_s13 = scalar_lea.vmem %s2162_s12, 256  ;;  %p2056_p12 = scmp.lt.s32.totalorder %s2162_s12, %s2162_s12 }
  0x1b   :  { %p2052_p11 = scmp.ne.s32.totalorder %s2162_s12, %s2051_s13  ;;  %p2057_p13 = scmp.lt.s32.totalorder %s2051_s13, %s2051_s13 }
  0x1d   :  { %p2058_p0 = por %p2057_p13, %p2056_p12 }
  0x1f   :  { %p2059_p1 = pnand %p2058_p0, %p2052_p11 }
  0x21   :  { %2062 = shalt.err (!%p2059_p1)
}
  0x22   :  { %28 = dma.hbm_to_vmem [thread:$0]  %s2604_s0, 256, %s2162_s12, [#allocation3], %s2105_s21, %s2105_s21, %s2106_s22  }
  0x23   :  { %s69_s16 = sshll.u32 %s2612_s8, 4  ;;  %s2107_s17 = smov [#allocation7]   ;;  %s70_s16 = int_to_ptr.vmem [resolvable:$true] %s69_s16 }
  0x24   :  { %s56_s18 = sshll.u32 %s2107_s17, 4  ;;  %s2063_s23 = scalar_lea.hbm %s2611_s7, 384  ;;  %s57_s18 = int_to_ptr.vmem [resolvable:$true] %s56_s18 }
  0x25   :  { %p2064_p2 = scmp.ne.s32.totalorder %s2611_s7, %s2063_s23  ;;  %p2067_p3 = scmp.lt.u32.totalorder %s2063_s23, %s2611_s7 }
  0x27   :  { %p2069_p4 = pnand %p2067_p3, %p2064_p2 }
  0x29   :  { %2072 = shalt.err (!%p2069_p4)
}
  0x2a   :  { %s2073_s0 = scalar_lea.vmem %s57_s18, 384  ;;  %p2078_p6 = scmp.lt.s32.totalorder %s57_s18, %s57_s18 }
  0x2b   :  { %p2074_p5 = scmp.ne.s32.totalorder %s57_s18, %s2073_s0  ;;  %p2079_p7 = scmp.lt.s32.totalorder %s2073_s0, %s2073_s0 }
  0x2d   :  { %p2080_p8 = por %p2079_p7, %p2078_p6 }
  0x2f   :  { %p2081_p9 = pnand %p2080_p8, %p2074_p5 }
  0x31   :  { %2084 = shalt.err (!%p2081_p9)
}
  0x32   :  { %62 = dma.hbm_to_vmem [thread:$0]  %s2611_s7, 384, %s57_s18, [#allocation6], %s2105_s21, %s2105_s21, %s2106_s22  }
  0x33   :  { %s2085_s28 = scalar_lea.vmem %s70_s16, 16  ;;  %p2090_p11 = scmp.lt.s32.totalorder %s70_s16, %s70_s16 }
  0x34   :  { %p2086_p10 = scmp.ne.s32.totalorder %s70_s16, %s2085_s28  ;;  %p2091_p12 = scmp.lt.s32.totalorder %s2085_s28, %s2085_s28 }
  0x36   :  { %p2092_p13 = por %p2091_p12, %p2090_p11 }
  0x38   :  { %p2093_p0 = pnand %p2092_p13, %p2086_p10 }
  0x3a   :  { %2096 = shalt.err (!%p2093_p0)
}
  0x3b   :  { %s2108_s29 = smov [#allocation8]  }
  0x3c   :  { %72 = dma.vmem_to_smem %s70_s16, 16, %s2108_s29, [#allocation4]  }
  0x3d   :  { %2097 = dma.done.wait [#allocation3], 256  }
  0x3e   :  { %2098 = vsyncadd [#allocation3], 4294967040 }
  0x3f   :  { %2099 = dma.done.wait [#allocation6], 896  }
  0x40   :  { %2100 = vsyncadd [#allocation6], 4294966400 }
  0x41   :  { %2101 = dma.done.wait [#allocation4], 16  }
  0x42   :  { %2102 = vsyncadd [#allocation4], 4294967280 }
  0x43   :  { %85 = sfence }
  0x44   :  { %v1911_v0 = vld [vmem:[%s2609_s5 + $0x4] ss:$40 sps:$4 sm:$0xff]   ;;  %v1913_v1 = vld [vmem:[%s2609_s5] ss:$40 sps:$4 sm:$0xff]   ;;  %v2109_v2 = vmov 0   ;;  %vm169_vm0 = vcmask 261120   ;;  %v588_v27 = vlaneseq }
  0x45   :  { %205 = vmatprep.mubr.bf16.mxu0 %v2109_v2  ;;  %248 = vmatprep.mubr.bf16.mxu1 %v2109_v2  ;;  %v1914_v3 = vld [vmem:[%s2609_s5 + $0x54] ss:$40 sps:$4 sm:$0xff]   ;;  %v1916_v4 = vld [vmem:[%s2609_s5 + $0x50] ss:$40 sps:$4 sm:$0xff]   ;;  %v90_v5 = vld [vmem:[#allocation2] sm:$0xff]  ;;  %vm404_vm1 = vcmask 130048  }
  0x46   :  { %173 = vmatprep.subr.bf16.mxu0 %v1911_v0  ;;  %v91_v6 = vld [vmem:[#allocation2 + $0x8] sm:$0xff]  ;;  %v1919_v7 = vld [vmem:[%s2609_s5 + $0x14] ss:$40 sps:$4 sm:$0xff]   ;;  %v1917_v8 = vld [vmem:[%s2609_s5 + $0x10] ss:$40 sps:$4 sm:$0xff]   ;;  %v2292_v28 = vshrl.u32 %v588_v27, 7 }
  0x47   :  { %174 = vmatpush1.bf16.msra.mxu0 %v1913_v1  ;;  %v108_v9 = vpack.c.bf16 %v91_v6, %v90_v5  ;;  %v1922_v10 = vld [vmem:[%s2609_s5 + $0x64] ss:$40 sps:$4 sm:$0xff]   ;;  %v1925_v12 = vld [vmem:[%s2609_s5 + $0x8] ss:$40 sps:$4 sm:$0xff]   ;;  %v1928_v14 = vld [vmem:[%s2609_s5 + $0x58] ss:$40 sps:$4 sm:$0xff]  }
  0x48   :  { %175 = vmatprep.subr.bf16.mxu0 %v1914_v3  ;;  %v1923_v11 = vld [vmem:[%s2609_s5 + $0xc] ss:$40 sps:$4 sm:$0xff]   ;;  %v1926_v13 = vld [vmem:[%s2609_s5 + $0x5c] ss:$40 sps:$4 sm:$0xff]   ;;  %v1920_v15 = vld [vmem:[%s2609_s5 + $0x60] ss:$40 sps:$4 sm:$0xff]  }
  0x49   :  { %216 = vmatprep.subr.bf16.mxu1 %v1923_v11  ;;  %v1929_v16 = vld [vmem:[%s2609_s5 + $0x18] ss:$40 sps:$4 sm:$0xff]   ;;  %v1931_v17 = vld [vmem:[%s2609_s5 + $0x1c] ss:$40 sps:$4 sm:$0xff]   ;;  %v1934_v18 = vld [vmem:[%s2609_s5 + $0x6c] ss:$40 sps:$4 sm:$0xff]  }
  0x4a   :  { %217 = vmatpush1.bf16.msra.mxu1 %v1925_v12  ;;  %v1932_v19 = vld [vmem:[%s2609_s5 + $0x68] ss:$40 sps:$4 sm:$0xff]   ;;  %v2275_v21 = vld [vmem:[#allocation5 + $0x8] sm:$0xff]  ;;  %v2281_v23 = vld [vmem:[#allocation5 + $0x10] sm:$0xff]  ;;  %v2295_v32 = vsub.s32 3, %v2292_v28  ;;  %vm2111_vm2 = vmmov 0  }
  0x4b   :  { %176 = vmatpush1.bf16.msra.mxu0 %v1916_v4  ;;  %218 = vmatprep.subr.bf16.mxu1 %v1926_v13  ;;  %v2273_v20 = vld [vmem:[#allocation5] sm:$0xff]  ;;  %v2283_v24 = vld [vmem:[#allocation5 + $0x18] sm:$0xff]  ;;  %v1935_v26 = vld [vmem:[%s2606_s2] sm:$0xff]   ;;  %v2110_v13 = vmov 0.0   ;;  %vm1325_vm3 = vcmask 523264   ;;  %s1737_s0 = sld [smem:[#allocation8 + $0x1]] }
  0x4c   :  { %259 = vmatprep.subr.bf16.mxu0 %v1919_v7  ;;  %v306_v22 = vpack.c.bf16 %v2275_v21, %v2273_v20  ;;  %v307_v25 = vpack.c.bf16 %v2283_v24, %v2281_v23  ;;  %v2297_v35 = vld [vmem:[#allocation7] sm:$0xff]  ;;  %v1936_v52 = vld [vmem:[%s2606_s2 + $0x8] sm:$0xff]   ;;  %v1937_v54 = vld [vmem:[%s2607_s3] sm:$0xff]   ;;  %s1738_s8 = sld [smem:[#allocation8 + $0x2]] }
  0x4d   :  { %v623_v37 = vrot.slane %v2297_v35, %v2295_v32  ;;  %v1938_v55 = vld [vmem:[%s2607_s3 + $0x8] sm:$0xff]   ;;  %v2346_v11 = vld [vmem:[%s2610_s6 + $0x10] sm:$0xff]   ;;  %v1941_v12 = vld [vmem:[%s2610_s6] sm:$0xff]  }
  0x4e   :  { %1697 = vmatmul.mubr.msk.bf16.vlgmr.msra.gmra.mrb[0].mxu0 %vm169_vm0, %v108_v9  ;;  %219 = vmatpush1.bf16.msra.mxu1 %v1928_v14 }
  0x4f   :  { %260 = vmatpush1.bf16.msra.mxu0 %v1917_v8  ;;  %291 = vmatprep.mubr.bf16.mxu0 %v2109_v2 }
  0x50   :  { %261 = vmatprep.subr.bf16.mxu0 %v1922_v10  ;;  %334 = vmatprep.subr.bf16.mxu1 %v1931_v17  ;;  %v2339_v10 = vld [vmem:[%s2610_s6 + $0x8] sm:$0xff]  }
  0x51   :  { %1698 = vmatmul.mubr.msk.bf16.vlgmr.msra.gmra.mrb[0].mxu1 %vm169_vm0, %v108_v9 }
  0x52   :  { %366 = vmatprep.mubr.bf16.mxu1 %v2109_v2  ;;  %335 = vmatpush1.bf16.msra.mxu1 %v1929_v16 }
  0x53   :  { %262 = vmatpush1.bf16.msra.mxu0 %v1920_v15  ;;  %336 = vmatprep.subr.bf16.mxu1 %v1934_v18 }
  0x56   :  { %1699 = vmatmul.mubr.msk.bf16.vlgmr.msra.gmra.mrb[4].mxu0 %vm169_vm0, %v108_v9  ;;  %337 = vmatpush1.bf16.msra.mxu1 %v1932_v19 }
  0x57   :  { %443 = vmatprep.mubr.bf16.mxu0 %v2109_v2 }
  0x59   :  { %1704 = vmatmul.mubr.msk.bf16.vlgmr.msra.gmra.mrb[4].mxu1 %vm169_vm0, %v306_v22  ;;  %v2363_v22 = vsub.s32 0, %v2292_v28 }
  0x5a   :  { %376 = vmatprep.mubr.bf16.mxu1 %v2109_v2 }
  0x61   :  { %1705 = vmatmul.mubr.msk.bf16.gmra.mrb[8].mxu1 %vm169_vm0, %v307_v25 }
  0x62   :  { %1804 = vmatprep.mubr.msk.bf16.mxu1 %vm404_vm1, %v1935_v26 }
 0x121   :  { %v207_v29 = vpop.f32.mrb[0].mxu0 }
 0x122   :  { %v209_v30 = vpop.f32.mrb[1].mxu0 }
 0x123   :  { %v211_v31 = vpop.f32.mrb[2].mxu0 }
 0x124   :  { %v391_v33 = vpack.c.bf16 %v211_v31, %v207_v29  ;;  %v213_v34 = vpop.f32.mrb[3].mxu0  ;;  %v250_v38 = vpop.f32.mrb[0].mxu1  ;;  %v614_v29 = vsub.s32 4, %v2292_v28  ;;  %v2369_v31 = vsub.s32 2, %v2292_v28 }
 0x125   :  { %v392_v36 = vpack.c.bf16 %v213_v34, %v209_v30  ;;  %v252_v39 = vpop.f32.mrb[1].mxu1  ;;  %v591_v34 = vrot.slane %v2297_v35, %v2363_v22 }
 0x126   :  { %v254_v41 = vpop.f32.mrb[2].mxu1 }
 0x127   :  { %411 = vmatprep.subr.bf16.mxu0 %v392_v36  ;;  %v393_v43 = vpack.c.bf16 %v254_v41, %v250_v38  ;;  %v256_v44 = vpop.f32.mrb[3].mxu1  ;;  %v607_v38 = vrot.slane %v2297_v35, %v2369_v31 }
 0x128   :  { %412 = vmatpush1.bf16.msra.mxu0 %v391_v33  ;;  %v517_v47 = vpack.c.bf16 %v256_v44, %v252_v39  ;;  %v750_v39 = vsub.s32 5, %v2292_v28 }
 0x129   :  { %v293_v40 = vpop.f32.mrb[4].mxu0  ;;  %1802 = vmatprep.subr.bf16.mxu1 %v393_v43 }
 0x12a   :  { %v295_v42 = vpop.f32.mrb[5].mxu0  ;;  %1803 = vmatpush3.bf16.msra.mxu1 %v393_v43 }
 0x12b   :  { %v624_v45 = vadd.f32 %v623_v37, %v295_v42  ;;  %v297_v46 = vpop.f32.mrb[6].mxu0  ;;  %1708 = vmatmul.mubr.msk.bf16.vlgmr.msra.gmra.mrb[8].mxu0 %vm404_vm1, %v1935_v26  ;;  %1808 = vmatprep.subr.bf16.mxu1 %v2110_v13 }
 0x12c   :  { %v518_v48 = vpack.c.bf16 %v297_v46, %v293_v40  ;;  %v299_v49 = vpop.f32.mrb[7].mxu0  ;;  %453 = vmatprep.mubr.bf16.mxu0 %v2109_v2 }
 0x12d   :  { %v625_v50 = vadd.f32 %v623_v37, %v299_v49  ;;  %v626_v51 = vsel %vm404_vm1, %v624_v45, 0.0  ;;  %1805 = vmatmul.mubr.msk.bf16.vlgmr.msra.gmra.mrb[12].mxu1 %vm404_vm1, %v1936_v52  ;;  %v615_v37 = vrot.slane %v2297_v35, %v614_v29 }
 0x12e   :  { %535 = vmatprep.subr.bf16.mxu0 %v518_v48  ;;  %627 = vadd.xlane.f32.xlu0 %v626_v51  ;;  %v751_v48 = vrot.slane %v2297_v35, %v750_v39 }
 0x12f   :  { %536 = vmatpush1.bf16.msra.mxu0 %v517_v47  ;;  %v629_v53 = vsel %vm404_vm1, %v625_v50, 0.0  ;;  %1810 = vmatprep.mubr.msk.bf16.mxu1 %vm2111_vm2, %v2110_v13 }
 0x130   :  { %1822 = vmatprep.subr.bf16.mxu0 %v2339_v10  ;;  %1809 = vmatpush3.bf16.msra.mxu1 %v1941_v12 }
 0x131   :  { %1814 = vmatprep.subr.bf16.mxu1 %v2339_v10 }
 0x132   :  { %630 = vadd.xlane.f32.xlu0 %v629_v53 }
 0x133   :  { %1709 = vmatmul.mubr.msk.bf16.gmra.mrb[12].mxu0 %vm404_vm1, %v1936_v52 }
 0x134   :  { %567 = vmatprep.mubr.bf16.mxu0 %v2109_v2 }
 0x13b   :  { %1714 = vmatmul.mubr.msk.bf16.vlgmr.msra.gmra.mrb[16].mxu0 %vm404_vm1, %v1937_v54 }
 0x13c   :  { %577 = vmatprep.mubr.bf16.mxu0 %v2109_v2  ;;  %v368_v2 = vpop.f32.mrb[4].mxu1  ;;  %1823 = vmatpush3.bf16.msra.mxu0 %v2339_v10 }
 0x13d   :  { %v370_v3 = vpop.f32.mrb[5].mxu1  ;;  %1824 = vmatprep.subr.bf16.mxu0 %v2346_v11  ;;  %v616_v43 = vadd.f32 %v615_v37, %v368_v2 }
 0x13e   :  { %v372_v4 = vpop.f32.mrb[6].mxu1 }
 0x13f   :  { %v374_v5 = vpop.f32.mrb[7].mxu1  ;;  %v617_v49 = vadd.f32 %v615_v37, %v372_v4 }
 0x140   :  { %v378_v6 = vpop.f32.mrb[8].mxu1  ;;  %1825 = vmatpush3.bf16.msra.mxu0 %v2346_v11 }
 0x141   :  { %v2330_v7 = vpop.f32.mrb[9].mxu1  ;;  %1838 = vmatprep.subr.bf16.mxu0 %v2339_v10  ;;  %v618_v4 = vadd.f32 %v615_v37, %v378_v6 }
 0x142   :  { %v2332_v8 = vpop.f32.mrb[10].mxu1 }
 0x143   :  { %1715 = vmatmul.mubr.msk.bf16.gmra.mrb[20].mxu0 %vm404_vm1, %v1938_v55  ;;  %v2334_v9 = vpop.f32.mrb[11].mxu1 }
 0x1bb   :  { %v628_v56 = vpop.xlane.xlu0 %627 }
 0x1bc   :  { %v633_v57 = vmul.f32 0.0625, %v628_v56 }
 0x1be   :  { %v2320_v58 = vsub.f32 %v624_v45, %v633_v57 }
 0x1bf   :  { %v631_v59 = vpop.xlane.xlu0 %630 }
 0x1c0   :  { %v634_v60 = vmul.f32 0.0625, %v631_v59  ;;  %v637_v61 = vmul.f32 %v2320_v58, %v2320_v58 }
 0x1c2   :  { %v2324_v62 = vsub.f32 %v625_v50, %v634_v60  ;;  %v639_v63 = vsel %vm404_vm1, %v637_v61, 0.0 }
 0x1c3   :  { %640 = vadd.xlane.f32.xlu1 %v639_v63 }
 0x1c4   :  { %v638_v0 = vmul.f32 %v2324_v62, %v2324_v62 }
 0x1c6   :  { %v642_v1 = vsel %vm404_vm1, %v638_v0, 0.0 }
 0x1c7   :  { %643 = vadd.xlane.f32.xlu1 %v642_v1 }
 0x1fe   :  { %v445_v14 = vpop.f32.mrb[8].mxu0 }
 0x1ff   :  { %v2358_v15 = vpop.f32.mrb[9].mxu0  ;;  %v592_v40 = vadd.f32 %v591_v34, %v445_v14 }
 0x200   :  { %v449_v16 = vpop.f32.mrb[10].mxu0  ;;  %v1806_v18 = vpop.f32.mrb[12].mxu1 }
 0x201   :  { %v2360_v17 = vpop.f32.mrb[11].mxu0  ;;  %v498_v19 = vpop.f32.mrb[13].mxu1  ;;  %v593_v42 = vadd.f32 %v591_v34, %v449_v16 }
 0x202   :  { %v1807_v25 = vpop.f32.mrb[14].mxu1 }
 0x203   :  { %v501_v27 = vpop.f32.mrb[15].mxu1 }
 0x206   :  { %v455_v26 = vpop.f32.mrb[12].mxu0 }
 0x207   :  { %v2366_v30 = vpop.f32.mrb[13].mxu0  ;;  %v594_v60 = vadd.f32 %v591_v34, %v455_v26 }
 0x208   :  { %v459_v33 = vpop.f32.mrb[14].mxu0 }
 0x209   :  { %v2373_v36 = vpop.f32.mrb[15].mxu0  ;;  %v595_v2 = vadd.f32 %v591_v34, %v459_v33 }
 0x20e   :  { %v569_v41 = vpop.f32.mrb[16].mxu0 }
 0x20f   :  { %v608_v44 = vadd.f32 %v607_v38, %v569_v41  ;;  %v571_v45 = vpop.f32.mrb[17].mxu0 }
 0x210   :  { %v573_v46 = vpop.f32.mrb[18].mxu0  ;;  %v740_v47 = vadd.f32 %v571_v45, %v498_v19 }
 0x211   :  { %v732_v50 = vmul.f32 %v608_v44, %v592_v40  ;;  %v609_v51 = vadd.f32 %v607_v38, %v573_v46  ;;  %v575_v52 = vpop.f32.mrb[19].mxu0 }
 0x212   :  { %v744_v53 = vadd.f32 %v740_v47, %v370_v3  ;;  %v741_v54 = vadd.f32 %v575_v52, %v501_v27 }
 0x213   :  { %v2384_v55 = vmul.f32 %v732_v50, %v616_v43  ;;  %v733_v56 = vmul.f32 %v609_v51, %v593_v42  ;;  %v661_v50 = vsub.s32 7, %v2292_v28 }
 0x214   :  { %v2386_v57 = vadd.f32 %v751_v48, %v744_v53  ;;  %v745_v59 = vadd.f32 %v741_v54, %v374_v5  ;;  %v619_v5 = vadd.f32 %v615_v37, %v2332_v8 }
 0x215   :  { %v2388_v61 = vmul.f32 %v733_v56, %v617_v49  ;;  %v655_v49 = vsub.s32 6, %v2292_v28  ;;  %v662_v54 = vrot.slane %v2297_v35, %v661_v50 }
 0x216   :  { %v829_v63 = vmul.f32 %v2386_v57, %v2386_v57  ;;  %v2392_v0 = vadd.f32 %v751_v48, %v745_v59  ;;  %v579_v1 = vpop.f32.mrb[20].mxu0 }
 0x217   :  { %v610_v12 = vadd.f32 %v607_v38, %v579_v1  ;;  %v581_v3 = vpop.f32.mrb[21].mxu0  ;;  %v656_v51 = vrot.slane %v2297_v35, %v655_v49 }
 0x218   :  { %v830_v14 = vmul.f32 %v2392_v0, %v2392_v0  ;;  %v742_v16 = vadd.f32 %v1806_v18, %v581_v3  ;;  %v583_v19 = vpop.f32.mrb[22].mxu0 }
 0x219   :  { %v734_v26 = vmul.f32 %v610_v12, %v594_v60  ;;  %v611_v27 = vadd.f32 %v607_v38, %v583_v19  ;;  %v585_v40 = vpop.f32.mrb[23].mxu0 }
 0x21a   :  { %v746_v41 = vadd.f32 %v742_v16, %v2330_v7  ;;  %v743_v42 = vadd.f32 %v1807_v25, %v585_v40  ;;  %v833_v43 = vpack.c.bf16 %v830_v14, %v829_v63  ;;  %v760_v14 = vpack.c.bf16 %v2392_v0, %v2386_v57  ;;  %v1943_v16 = vld [vmem:[%s2610_s6 + $0x20] sm:$0xff]  }
 0x21b   :  { %v2398_v44 = vmul.f32 %v734_v26, %v618_v4  ;;  %v735_v33 = vmul.f32 %v611_v27, %v595_v2 }
 0x21c   :  { %v2400_v6 = vadd.f32 %v751_v48, %v746_v41  ;;  %v747_v34 = vadd.f32 %v743_v42, %v2334_v9  ;;  %1826 = vmatprep.mubr.msk.bf16.mxu0 %vm169_vm0, %v833_v43 }
 0x21d   :  { %v2404_v18 = vmul.f32 %v735_v33, %v619_v5 }
 0x21e   :  { %v831_v8 = vmul.f32 %v2400_v6, %v2400_v6  ;;  %v2408_v37 = vadd.f32 %v751_v48, %v747_v34 }
 0x220   :  { %v832_v7 = vmul.f32 %v2408_v37, %v2408_v37 }
 0x222   :  { %v834_v25 = vpack.c.bf16 %v832_v7, %v831_v8 }
 0x224   :  { %1827 = vmatmul.mubr.msk.bf16.vlgmr.msra.gmra.mrb[24].mxu0 %vm169_vm0, %v834_v25 }
 0x225   :  { %1839 = vmatpush3.bf16.msra.mxu0 %v2339_v10 }
 0x226   :  { %1840 = vmatprep.subr.bf16.mxu0 %v2346_v11 }
 0x229   :  { %1841 = vmatpush3.bf16.msra.mxu0 %v2346_v11 }
 0x22a   :  { %1854 = vmatprep.subr.bf16.mxu0 %v2110_v13 }
 0x250   :  { %v641_v9 = vpop.xlane.xlu1 %640 }
 0x251   :  { %v645_v38 = vmul.f32 0.0625, %v641_v9 }
 0x253   :  { %v647_v45 = vadd.f32 1e-05, %v645_v38 }
 0x254   :  { %v644_v46 = vpop.xlane.xlu1 %643 }
 0x255   :  { %1957 = vrsqrt.f32 %v647_v45  ;;  %v646_v47 = vmul.f32 0.0625, %v644_v46 }
 0x257   :  { %v648_v48 = vadd.f32 1e-05, %v646_v47 }
 0x259   :  { %1959 = vrsqrt.f32 %v648_v48 }
 0x25f   :  { %v1958_v52 = vpop.eup %1957 }
 0x260   :  { %v651_v53 = vmul.f32 %v1958_v52, %v2320_v58  ;;  %v761_v58 = vpack.c.bf16 %v2408_v37, %v2400_v6 }
 0x262   :  { %v657_v56 = vmul.f32 %v656_v51, %v651_v53 }
 0x263   :  { %v1960_v59 = vpop.eup %1959 }
 0x264   :  { %v652_v60 = vmul.f32 %v1960_v59, %v2324_v62  ;;  %v663_v63 = vadd.f32 %v662_v54, %v657_v56  ;;  %v1942_v62 = vld [vmem:[%s2610_s6 + $0x18] sm:$0xff]  }
 0x266   :  { %v658_v1 = vmul.f32 %v656_v51, %v652_v60  ;;  %1961 = vtanh.f32 %v663_v63  ;;  %v2449_v63 = vsub.s32 1, %v2292_v28 }
 0x268   :  { %v664_v2 = vadd.f32 %v662_v54, %v658_v1  ;;  %v2451_v1 = vld [vmem:[#allocation7 + $0x8] sm:$0xff] }
 0x26a   :  { %1963 = vtanh.f32 %v664_v2 }
 0x270   :  { %v1962_v4 = vpop.eup %1961 }
 0x274   :  { %v1964_v12 = vpop.eup %1963 }
 0x275   :  { %v669_v3 = vpack.c.bf16 %v1964_v12, %v1962_v4  ;;  %v921_v4 = vrot.slane %v2451_v1, %v2449_v63 }
 0x277   :  { %1811 = vmatmul.mubr.msk.bf16.vlgmr.msra.gmra.mrb[16].mxu1 %vm404_vm1, %v669_v3 }
 0x278   :  { %1815 = vmatpush3.bf16.msra.mxu1 %v2339_v10  ;;  %1818 = vmatprep.mubr.msk.bf16.mxu1 %vm169_vm0, %v760_v14 }
 0x279   :  { %1816 = vmatprep.subr.bf16.mxu1 %v2346_v11 }
 0x27c   :  { %1817 = vmatpush3.bf16.msra.mxu1 %v2346_v11 }
 0x27d   :  { %1830 = vmatprep.subr.bf16.mxu1 %v1942_v62 }
 0x27f   :  { %1819 = vmatmul.mubr.msk.bf16.vlgmr.msra.gmra.mrb[20].mxu1 %vm169_vm0, %v761_v58 }
 0x280   :  { %1831 = vmatpush3.bf16.msra.mxu1 %v1942_v62  ;;  %v929_v62 = vrot.slane %v2451_v1, %v2369_v31 }
 0x281   :  { %1832 = vmatprep.subr.bf16.mxu1 %v1943_v16 }
 0x284   :  { %1833 = vmatpush3.bf16.msra.mxu1 %v1943_v16 }
 0x285   :  { %1846 = vmatprep.subr.bf16.mxu1 %v2110_v13 }
 0x2f7   :  { %v1828_v10 = vpop.f32.mrb[24].mxu0 }
 0x2f8   :  { %v875_v11 = vpop.f32.mrb[25].mxu0 }
 0x2f9   :  { %v1829_v19 = vpop.f32.mrb[26].mxu0 }
 0x2fa   :  { %v878_v5 = vpop.f32.mrb[27].mxu0 }
 0x34a   :  { %v2444_v26 = vpop.f32.mrb[16].mxu1 }
 0x34b   :  { %v1812_v27 = vpop.f32.mrb[17].mxu1 }
 0x34c   :  { %v2446_v40 = vpop.f32.mrb[18].mxu1 }
 0x34d   :  { %v1813_v41 = vpop.f32.mrb[19].mxu1 }
 0x352   :  { %v1820_v42 = vpop.f32.mrb[20].mxu1 }
 0x353   :  { %v892_v43 = vmul.f32 %v1820_v42, %v1820_v42  ;;  %v814_v33 = vpop.f32.mrb[21].mxu1  ;;  %v904_v2 = vsub.f32 %v2400_v6, %v1820_v42 }
 0x354   :  { %v890_v34 = vmul.f32 %v814_v33, %v814_v33  ;;  %v1821_v8 = vpop.f32.mrb[22].mxu1  ;;  %v902_v3 = vsub.f32 %v2386_v57, %v814_v33 }
 0x355   :  { %v896_v7 = vsub.f32 %v1828_v10, %v892_v43  ;;  %v893_v25 = vmul.f32 %v1821_v8, %v1821_v8  ;;  %v817_v9 = vpop.f32.mrb[23].mxu1  ;;  %v905_v16 = vsub.f32 %v2408_v37, %v1821_v8 }
 0x356   :  { %v894_v38 = vsub.f32 %v875_v11, %v890_v34  ;;  %v891_v45 = vmul.f32 %v817_v9, %v817_v9 }
 0x357   :  { %v900_v46 = vmax.f32 %v896_v7, 0.0  ;;  %v897_v47 = vsub.f32 %v1829_v19, %v893_v25  ;;  %v903_v19 = vsub.f32 %v2392_v0, %v817_v9 }
 0x358   :  { %v898_v48 = vmax.f32 %v894_v38, 0.0  ;;  %v895_v51 = vsub.f32 %v878_v5, %v891_v45 }
 0x359   :  { %v908_v52 = vadd.f32 1e-05, %v900_v46  ;;  %v901_v53 = vmax.f32 %v897_v47, 0.0  ;;  %v947_v46 = vrot.slane %v2451_v1, %v2295_v32 }
 0x35a   :  { %v906_v54 = vadd.f32 1e-05, %v898_v48  ;;  %v899_v56 = vmax.f32 %v895_v51, 0.0 }
 0x35b   :  { %1965 = vrsqrt.f32 %v908_v52  ;;  %v909_v59 = vadd.f32 1e-05, %v901_v53 }
 0x35c   :  { %1967 = vrsqrt.f32 %v906_v54  ;;  %v907_v60 = vadd.f32 1e-05, %v899_v56 }
 0x35d   :  { %1969 = vrsqrt.f32 %v909_v59 }
 0x35e   :  { %1971 = vrsqrt.f32 %v907_v60 }
 0x365   :  { %v1966_v12 = vpop.eup %1965 }
 0x366   :  { %v1968_v14 = vpop.eup %1967  ;;  %v916_v58 = vmul.f32 %v1966_v12, %v904_v2 }
 0x367   :  { %v1970_v10 = vpop.eup %1969  ;;  %v914_v11 = vmul.f32 %v1968_v14, %v902_v3 }
 0x368   :  { %v1972_v5 = vpop.eup %1971  ;;  %v924_v27 = vmul.f32 %v921_v4, %v916_v58  ;;  %v917_v6 = vmul.f32 %v1970_v10, %v905_v16 }
 0x369   :  { %v922_v41 = vmul.f32 %v921_v4, %v914_v11  ;;  %v915_v42 = vmul.f32 %v1972_v5, %v903_v19 }
 0x36a   :  { %v932_v43 = vadd.f32 %v929_v62, %v924_v27  ;;  %v925_v34 = vmul.f32 %v921_v4, %v917_v6 }
 0x36b   :  { %v930_v7 = vadd.f32 %v929_v62, %v922_v41  ;;  %v923_v57 = vmul.f32 %v921_v4, %v915_v42 }
 0x36c   :  { %1973 = vtanh.f32 %v932_v43  ;;  %v933_v33 = vadd.f32 %v929_v62, %v925_v34 }
 0x36d   :  { %1975 = vtanh.f32 %v930_v7  ;;  %v931_v25 = vadd.f32 %v929_v62, %v923_v57 }
 0x36e   :  { %1977 = vtanh.f32 %v933_v33 }
 0x36f   :  { %1979 = vtanh.f32 %v931_v25 }
 0x376   :  { %v1974_v37 = vpop.eup %1973 }
 0x377   :  { %v1976_v8 = vpop.eup %1975 }
 0x378   :  { %v1978_v38 = vpop.eup %1977 }
 0x379   :  { %v1980_v45 = vpop.eup %1979  ;;  %v943_v0 = vpack.c.bf16 %v1978_v38, %v1974_v37 }
 0x37a   :  { %v942_v9 = vpack.c.bf16 %v1980_v45, %v1976_v8 }
 0x37c   :  { %1834 = vmatprep.mubr.msk.bf16.mxu1 %vm169_vm0, %v942_v9 }
 0x37d   :  { %1835 = vmatmul.mubr.msk.bf16.vlgmr.msra.gmra.mrb[24].mxu1 %vm169_vm0, %v943_v0 }
 0x37e   :  { %1850 = vmatprep.mubr.msk.bf16.mxu1 %vm2111_vm2, %v2110_v13 }
 0x450   :  { %v1836_v47 = vpop.f32.mrb[24].mxu1 }
 0x451   :  { %v1009_v48 = vadd.f32 %v1836_v47, %v947_v46  ;;  %v1000_v51 = vpop.f32.mrb[25].mxu1 }
 0x452   :  { %v1001_v52 = vadd.f32 %v1000_v51, %v947_v46  ;;  %v1837_v53 = vpop.f32.mrb[26].mxu1 }
 0x453   :  { %v1017_v54 = vmul.f32 0.5, %v1009_v48  ;;  %v1012_v56 = vadd.f32 %v1837_v53, %v947_v46  ;;  %v1003_v59 = vpop.f32.mrb[27].mxu1 }
 0x454   :  { %v1015_v60 = vmul.f32 0.5, %v1001_v52  ;;  %v1004_v2 = vadd.f32 %v1003_v59, %v947_v46 }
 0x455   :  { %1981 = vtanh.f32 %v1017_v54  ;;  %v1018_v4 = vmul.f32 0.5, %v1012_v56 }
 0x456   :  { %1983 = vtanh.f32 %v1015_v60  ;;  %v1016_v12 = vmul.f32 0.5, %v1004_v2  ;;  %v599_v60 = vrot.slane %v2297_v35, %v2449_v63 }
 0x457   :  { %1985 = vtanh.f32 %v1018_v4 }
 0x458   :  { %1987 = vtanh.f32 %v1016_v12  ;;  %v602_v2 = vadd.f32 %v599_v60, %v2366_v30  ;;  %v600_v12 = vadd.f32 %v599_v60, %v2358_v15  ;;  %v1944_v15 = vld [vmem:[%s2608_s4] sm:$0xff]   ;;  %v1946_v30 = vld [vmem:[%s2609_s5 + $0x70] ss:$40 sps:$4 sm:$0xff]  }
 0x45f   :  { %v1982_v3 = vpop.eup %1981 }
 0x460   :  { %v1984_v14 = vpop.eup %1983  ;;  %v1025_v58 = vmul.f32 0.5, %v1982_v3 }
 0x461   :  { %v1986_v62 = vpop.eup %1985  ;;  %v1023_v16 = vmul.f32 0.5, %v1984_v14  ;;  %v603_v14 = vadd.f32 %v599_v60, %v2373_v36  ;;  %v1947_v36 = vld [vmem:[%s2609_s5 + $0x24] ss:$40 sps:$4 sm:$0xff]  }
 0x462   :  { %v1988_v10 = vpop.eup %1987  ;;  %v1029_v11 = vadd.f32 0.5, %v1025_v58  ;;  %v1026_v19 = vmul.f32 0.5, %v1986_v62 }
 0x463   :  { %v1027_v5 = vadd.f32 0.5, %v1023_v16  ;;  %v1024_v27 = vmul.f32 0.5, %v1988_v10  ;;  %v601_v16 = vadd.f32 %v599_v60, %v2360_v17  ;;  %v1945_v17 = vld [vmem:[%s2609_s5 + $0x20] ss:$40 sps:$4 sm:$0xff]  }
 0x464   :  { %v1030_v6 = vadd.f32 0.5, %v1026_v19  ;;  %v1033_v42 = vmul.f32 %v1029_v11, %v2398_v44 }
 0x465   :  { %v1028_v41 = vadd.f32 0.5, %v1024_v27  ;;  %v1031_v34 = vmul.f32 %v1027_v5, %v2384_v55 }
 0x466   :  { %v1034_v43 = vmul.f32 %v1030_v6, %v2404_v18 }
 0x467   :  { %v1032_v7 = vmul.f32 %v1028_v41, %v2388_v61 }
 0x468   :  { %v1036_v57 = vpack.c.bf16 %v1034_v43, %v1033_v42  ;;  %v1949_v42 = vld [vmem:[%s2610_s6 + $0x28] sm:$0xff]   ;;  %v1950_v43 = vld [vmem:[%s2610_s6 + $0x30] sm:$0xff]  }
 0x469   :  { %v1035_v33 = vpack.c.bf16 %v1032_v7, %v1031_v34  ;;  %v673_v34 = vrot.slane %v2451_v1, %v2363_v22 }
 0x46b   :  { %1842 = vmatprep.mubr.msk.bf16.mxu0 %vm169_vm0, %v1035_v33  ;;  %v718_v7 = vadd.f32 %v2444_v26, %v673_v34 }
 0x46c   :  { %1843 = vmatmul.mubr.msk.bf16.vlgmr.msra.gmra.mrb[28].mxu0 %vm169_vm0, %v1036_v57  ;;  %v721_v57 = vadd.f32 %v2446_v40, %v673_v34 }
 0x46d   :  { %1858 = vmatprep.mubr.msk.bf16.mxu0 %vm2111_vm2, %v2110_v13  ;;  %v724_v33 = vmul.f32 0.5, %v718_v7 }
 0x53f   :  { %v1844_v25 = vpop.f32.mrb[28].mxu0 }
 0x540   :  { %v1094_v37 = vmul.f32 8.0, %v1844_v25  ;;  %v1077_v8 = vpop.f32.mrb[29].mxu0  ;;  %v725_v25 = vmul.f32 0.5, %v721_v57 }
 0x541   :  { %v1092_v38 = vmul.f32 8.0, %v1077_v8  ;;  %v1845_v45 = vpop.f32.mrb[30].mxu0 }
 0x542   :  { %v1732_v0 = vclamps-f32 %v1094_v37, 0.005  ;;  %v1095_v9 = vmul.f32 8.0, %v1845_v45  ;;  %v1080_v46 = vpop.f32.mrb[31].mxu0 }
 0x543   :  { %v1730_v47 = vclamps-f32 %v1092_v38, 0.005  ;;  %v1093_v48 = vmul.f32 8.0, %v1080_v46 }
 0x544   :  { %v1108_v51 = vmul.f32 1.442695, %v1732_v0  ;;  %v1733_v52 = vclamps-f32 %v1095_v9, 0.005 }
 0x545   :  { %v1104_v53 = vmul.f32 1.442695, %v1730_v47  ;;  %v1731_v54 = vclamps-f32 %v1093_v48, 0.005 }
 0x546   :  { %1989 = vpow2.f32 %v1108_v51  ;;  %v1110_v56 = vmul.f32 1.442695, %v1733_v52 }
 0x547   :  { %1991 = vpow2.f32 %v1104_v53  ;;  %v1106_v59 = vmul.f32 1.442695, %v1731_v54 }
 0x548   :  { %1993 = vpow2.f32 %v1110_v56 }
 0x549   :  { %1995 = vpow2.f32 %v1106_v59 }
 0x54a   :  { %1997 = vtanh.f32 %v724_v33 }
 0x54b   :  { %1999 = vtanh.f32 %v725_v25 }
 0x550   :  { %v1990_v4 = vpop.eup %1989 }
 0x551   :  { %v1992_v3 = vpop.eup %1991  ;;  %v1116_v58 = vmul.f32 %v1990_v4, %v602_v2 }
 0x552   :  { %v1994_v62 = vpop.eup %1993  ;;  %v1114_v10 = vmul.f32 %v1992_v3, %v600_v12 }
 0x553   :  { %v1996_v11 = vpop.eup %1995  ;;  %v1172_v19 = vpack.c.bf16 %v1994_v62, %v1990_v4  ;;  %v1117_v5 = vmul.f32 %v1994_v62, %v603_v14  ;;  %v1423_v62 = vpack.c.bf16 %v2388_v61, %v2384_v55  ;;  %v1952_v55 = vld [vmem:[%s2610_s6 + $0x48] sm:$0xff]   ;;  %v1953_v61 = vld [vmem:[%s2610_s6 + $0x40] sm:$0xff]  }
 0x554   :  { %v1171_v27 = vpack.c.bf16 %v1996_v11, %v1992_v3  ;;  %v1115_v6 = vmul.f32 %v1996_v11, %v601_v16  ;;  %v1998_v37 = vpop.eup %1997  ;;  %v1424_v16 = vpack.c.bf16 %v2404_v18, %v2398_v44  ;;  %v1954_v44 = vld [vmem:[%s2610_s6 + $0x50] sm:$0xff]   ;;  %v1955_v18 = vld [vmem:[%s2610_s6 + $0x58] sm:$0xff]   ;;  %v1229_v11 = vrot.slane %v2451_v1, %v614_v29 }
 0x555   :  { %v1119_v41 = vpack.c.bf16 %v1117_v5, %v1116_v58  ;;  %v2000_v8 = vpop.eup %1999  ;;  %v728_v38 = vmul.f32 0.5, %v1998_v37  ;;  %v1948_v58 = vld [vmem:[%s2609_s5 + $0x74] ss:$40 sps:$4 sm:$0xff]  }
 0x556   :  { %1855 = vmatpush3.bf16.msra.mxu0 %v1171_v27  ;;  %v1118_v35 = vpack.c.bf16 %v1115_v6, %v1114_v10  ;;  %v729_v45 = vmul.f32 0.5, %v2000_v8  ;;  %v1951_v10 = vld [vmem:[%s2610_s6 + $0x38] sm:$0xff]  }
 0x557   :  { %1856 = vmatprep.subr.bf16.mxu0 %v2110_v13  ;;  %v730_v47 = vadd.f32 0.5, %v728_v38 }
 0x558   :  { %1847 = vmatpush3.bf16.msra.mxu1 %v1118_v35  ;;  %v731_v40 = vadd.f32 0.5, %v729_v45 }
 0x559   :  { %1848 = vmatprep.subr.bf16.mxu1 %v2110_v13 }
 0x55a   :  { %1857 = vmatpush3.bf16.msra.mxu0 %v1172_v19 }
 0x55b   :  { %1870 = vmatprep.subr.bf16.mxu0 %v2110_v13 }
 0x55c   :  { %1849 = vmatpush3.bf16.msra.mxu1 %v1119_v41 }
 0x55d   :  { %1859 = vmatmul.mubr.msk.bf16.vlgmr.msra.gmra.mrb[32].mxu0 %vm169_vm0, %v1944_v15  ;;  %1862 = vmatprep.subr.bf16.mxu1 %v2110_v13 }
 0x55e   :  { %1878 = vmatprep.mubr.msk.bf16.mxu0 %vm2111_vm2, %v2110_v13  ;;  %1871 = vmatpush3.bf16.msra.mxu0 %v1949_v42 }
 0x55f   :  { %1851 = vmatmul.mubr.msk.bf16.vlgmr.msra.gmra.mrb[28].mxu1 %vm169_vm0, %v1944_v15  ;;  %1872 = vmatprep.subr.bf16.mxu0 %v2110_v13 }
 0x560   :  { %1866 = vmatprep.mubr.msk.bf16.mxu1 %vm2111_vm2, %v2110_v13  ;;  %1863 = vmatpush3.bf16.msra.mxu1 %v1945_v17 }
 0x561   :  { %1864 = vmatprep.subr.bf16.mxu1 %v2110_v13 }
 0x562   :  { %1873 = vmatpush3.bf16.msra.mxu0 %v1950_v43 }
 0x563   :  { %1874 = vmatprep.subr.bf16.mxu0 %v2110_v13 }
 0x564   :  { %1865 = vmatpush3.bf16.msra.mxu1 %v1946_v30  ;;  %v1428_v30 = vrot.slane %v2451_v1, %v655_v49  ;;  %v1300_v49 = vrot.slane %v2451_v1, %v750_v39  ;;  %v1513_v39 = vrot.slane %v2451_v1, %v661_v50 }
 0x565   :  { %1882 = vmatprep.subr.bf16.mxu1 %v1947_v36 }
 0x566   :  { %1875 = vmatpush3.bf16.msra.mxu0 %v1951_v10 }
 0x567   :  { %1876 = vmatprep.subr.bf16.mxu0 %v2110_v13  ;;  %v1956_v13 = vld [vmem:[%s2610_s6 + $0x60] sm:$0xff]   ;;  %s1218_s6 = sld [smem:[#allocation8]] }
 0x56a   :  { %1877 = vmatpush3.bf16.msra.mxu0 %v1953_v61 }
 0x630   :  { %v1207_v0 = vpop.f32.mrb[32].mxu0 }
 0x631   :  { %v1208_v9 = vadd.f32 1e-30, %v1207_v0  ;;  %v1860_v46 = vpop.f32.mrb[33].mxu0 }
 0x632   :  { %v1162_v48 = vpop.f32.mrb[28].mxu1  ;;  %v1210_v51 = vpop.f32.mrb[34].mxu0  ;;  %v1370_v46 = vstv %s1218_s6 }
 0x633   :  { %2001 = vrcp.f32 %v1208_v9  ;;  %v1169_v52 = vmul.f32 %v1162_v48, %v730_v47  ;;  %v1211_v53 = vadd.f32 1e-30, %v1210_v51  ;;  %v1852_v26 = vpop.f32.mrb[29].mxu1  ;;  %v1861_v54 = vpop.f32.mrb[35].mxu0  ;;  %v1373_v48 = vstv %s1737_s0 }
 0x634   :  { %v1165_v56 = vpop.f32.mrb[30].mxu1 }
 0x635   :  { %2003 = vrcp.f32 %v1211_v53  ;;  %v1170_v59 = vmul.f32 %v1165_v56, %v731_v40  ;;  %v1853_v60 = vpop.f32.mrb[31].mxu1  ;;  %v2017_v53 = vld [vmem:[#allocation2] sm:$0xff] }
 0x636   :  { %v1371_v26 = vmul.f32 %v2017_v53, %v1370_v46  ;;  %v2018_v60 = vld [vmem:[#allocation2 + $0x8] sm:$0xff] }
 0x63d   :  { %v2002_v2 = vpop.eup %2001 }
 0x63e   :  { %v1215_v4 = vmul.f32 %v2002_v2, %v1169_v52  ;;  %v1372_v2 = vmul.f32 %v2018_v60, %v1370_v46 }
 0x63f   :  { %v2004_v12 = vpop.eup %2003 }
 0x640   :  { %v1217_v3 = vmul.f32 %v2004_v12, %v1170_v59 }
 0x642   :  { %v1225_v14 = vpack.c.bf16 %v1217_v3, %v1215_v4 }
 0x644   :  { %1867 = vmatmul.mubr.msk.bf16.vlgmr.msra.gmra.mrb[32].mxu1 %vm169_vm0, %v1225_v14 }
 0x645   :  { %1883 = vmatpush3.bf16.msra.mxu1 %v1947_v36  ;;  %1886 = vmatprep.mubr.msk.bf16.mxu1 %vm169_vm0, %v1423_v62  ;;  %v1593_v62 = vstv %s1738_s8 }
 0x646   :  { %1884 = vmatprep.subr.bf16.mxu1 %v1948_v58  ;;  %v1595_v50 = vmul.f32 %v1593_v62, %v2275_v21 }
 0x649   :  { %1885 = vmatpush3.bf16.msra.mxu1 %v1948_v58 }
 0x64a   :  { %1890 = vmatprep.subr.bf16.mxu1 %v1952_v55 }
 0x64c   :  { %1887 = vmatmul.mubr.msk.bf16.vlgmr.msra.gmra.mrb[36].mxu1 %vm169_vm0, %v1424_v16 }
 0x64d   :  { %1891 = vmatpush3.bf16.msra.mxu1 %v1952_v55 }
 0x64e   :  { %1892 = vmatprep.subr.bf16.mxu1 %v1954_v44 }
 0x651   :  { %1893 = vmatpush3.bf16.msra.mxu1 %v1954_v44 }
 0x652   :  { %1894 = vmatprep.subr.bf16.mxu1 %v1955_v18 }
 0x655   :  { %1895 = vmatpush3.bf16.msra.mxu1 %v1955_v18  ;;  %v1594_v18 = vmul.f32 %v1593_v62, %v2273_v20 }
 0x656   :  { %1896 = vmatprep.subr.bf16.mxu1 %v1956_v13 }
 0x659   :  { %1897 = vmatpush3.bf16.msra.mxu1 %v1956_v13 }
 0x717   :  { %v1279_v19 = vpop.f32.mrb[32].mxu1 }
 0x718   :  { %v1280_v5 = vadd.f32 %v1279_v19, %v1229_v11  ;;  %v1868_v27 = vpop.f32.mrb[33].mxu1  ;;  %v1596_v19 = vmul.f32 %v1593_v62, %v2281_v23 }
 0x719   :  { %v1282_v6 = vpop.f32.mrb[34].mxu1 }
 0x71a   :  { %v1283_v41 = vadd.f32 %v1282_v6, %v1229_v11  ;;  %v1869_v35 = vpop.f32.mrb[35].mxu1  ;;  %v1286_v15 = vmax.f32 %v1280_v5, 0.0 }
 0x71b   :  { %v1597_v35 = vmul.f32 %v1593_v62, %v2283_v24 }
 0x71c   :  { %v1287_v17 = vmax.f32 %v1283_v41, 0.0 }
 0x71e   :  { %v1296_v36 = vpack.c.bf16 %v1287_v17, %v1286_v15 }
 0x71f   :  { %v1888_v42 = vpop.f32.mrb[36].mxu1 }
 0x720   :  { %v1490_v43 = vadd.f32 %v1888_v42, %v1428_v30  ;;  %1879 = vmatmul.mubr.msk.bf16.vlgmr.msra.gmra.mrb[36].mxu0 %vm1325_vm3, %v1296_v36  ;;  %v1481_v34 = vpop.f32.mrb[37].mxu1 }
 0x721   :  { %v1482_v29 = vadd.f32 %v1481_v34, %v1428_v30  ;;  %v1889_v7 = vpop.f32.mrb[38].mxu1 }
 0x722   :  { %v1493_v57 = vadd.f32 %v1889_v7, %v1428_v30  ;;  %v1484_v33 = vpop.f32.mrb[39].mxu1  ;;  %v1498_v37 = vmax.f32 %v1490_v43, 0.0 }
 0x723   :  { %v1485_v25 = vadd.f32 %v1484_v33, %v1428_v30  ;;  %v1496_v38 = vmax.f32 %v1482_v29, 0.0 }
 0x724   :  { %v1499_v8 = vmax.f32 %v1493_v57, 0.0 }
 0x725   :  { %v1497_v45 = vmax.f32 %v1485_v25, 0.0 }
 0x726   :  { %v1509_v0 = vpack.c.bf16 %v1499_v8, %v1498_v37 }
 0x727   :  { %v1508_v9 = vpack.c.bf16 %v1497_v45, %v1496_v38 }
 0x729   :  { %1898 = vmatprep.mubr.msk.bf16.mxu1 %vm1325_vm3, %v1508_v9 }
 0x72a   :  { %1899 = vmatmul.mubr.msk.bf16.vlgmr.msra.gmra.mrb[40].mxu1 %vm1325_vm3, %v1509_v0 }
 0x7f3   :  { %v1363_v47 = vpop.f32.mrb[36].mxu0 }
 0x7f4   :  { %v1364_v51 = vadd.f32 %v1363_v47, %v1300_v49  ;;  %v1880_v52 = vpop.f32.mrb[37].mxu0 }
 0x7f5   :  { %v1366_v54 = vpop.f32.mrb[38].mxu0 }
 0x7f6   :  { %v1374_v40 = vmul.f32 %v1373_v48, %v1364_v51  ;;  %v1367_v56 = vadd.f32 %v1366_v54, %v1300_v49  ;;  %v1881_v59 = vpop.f32.mrb[39].mxu0 }
 0x7f8   :  { %v1375_v4 = vmul.f32 %v1373_v48, %v1367_v56  ;;  %v1376_v12 = vadd.f32 %v1374_v40, %v1371_v26 }
 0x7fa   :  { %v1378_v3 = vsel %vm169_vm0, %v1376_v12, 0.0  ;;  %v1377_v14 = vadd.f32 %v1375_v4, %v1372_v2 }
 0x7fb   :  { %1379 = vadd.xlane.f32.xlu0 %v1378_v3 }
 0x7fc   :  { %v1381_v58 = vsel %vm169_vm0, %v1377_v14, 0.0 }
 0x7fd   :  { %1382 = vadd.xlane.f32.xlu1 %v1381_v58  ;;  %v1900_v16 = vpop.f32.mrb[40].mxu1 }
 0x7fe   :  { %v1587_v10 = vadd.f32 %v1900_v16, %v1513_v39  ;;  %v1578_v55 = vpop.f32.mrb[41].mxu1  ;;  %v89_v16 = vld [vmem:[#allocation7 + $0x10] sm:$0xff] }
 0x7ff   :  { %v1579_v61 = vadd.f32 %v1578_v55, %v1513_v39  ;;  %v1901_v44 = vpop.f32.mrb[42].mxu1 }
 0x800   :  { %v1590_v13 = vadd.f32 %v1901_v44, %v1513_v39  ;;  %v1581_v11 = vpop.f32.mrb[43].mxu1  ;;  %v1600_v5 = vmul.f32 %v1587_v10, %v1373_v48  ;;  %v1408_v44 = vrot.slane %v89_v16, %v2363_v22 }
 0x801   :  { %v1598_v28 = vmul.f32 %v1579_v61, %v1373_v48  ;;  %v1582_v27 = vadd.f32 %v1581_v11, %v1513_v39 }
 0x802   :  { %v1601_v1 = vmul.f32 %v1590_v13, %v1373_v48  ;;  %v1604_v30 = vadd.f32 %v1600_v5, %v1596_v19  ;;  %v1414_v19 = vrot.slane %v89_v16, %v2449_v63 }
 0x803   :  { %v1599_v6 = vmul.f32 %v1582_v27, %v1373_v48  ;;  %v1602_v41 = vadd.f32 %v1598_v28, %v1594_v18 }
 0x804   :  { %v1605_v36 = vadd.f32 %v1601_v1, %v1597_v35  ;;  %v1612_v23 = vsel %vm169_vm0, %v1604_v30, 0.0 }
 0x805   :  { %v1606_v15 = vsel %vm169_vm0, %v1602_v41, 0.0  ;;  %v1603_v17 = vadd.f32 %v1599_v6, %v1595_v50 }
 0x806   :  { %1607 = vadd.xlane.f32.xlu0 %v1606_v15  ;;  %v1615_v42 = vsel %vm169_vm0, %v1605_v36, 0.0 }
 0x807   :  { %v1609_v20 = vsel %vm169_vm0, %v1603_v17, 0.0 }
 0x808   :  { %1610 = vadd.xlane.f32.xlu1 %v1609_v20 }
 0x80a   :  { %1613 = vadd.xlane.f32.xlu0 %v1612_v23 }
 0x80c   :  { %1616 = vadd.xlane.f32.xlu1 %v1615_v42  ;;  %v1669_v42 = vrot.slane %v89_v16, %v2295_v32 }
 0x888   :  { %v1380_v21 = vpop.xlane.xlu0 %1379 }
 0x889   :  { %v1385_v43 = vmul.f32 0.03125, %v1380_v21 }
 0x88a   :  { %v1383_v34 = vpop.xlane.xlu1 %1382 }
 0x88b   :  { %v1387_v29 = vsub.f32 %v1376_v12, %v1385_v43  ;;  %v1386_v24 = vmul.f32 0.03125, %v1383_v34 }
 0x88d   :  { %v1388_v7 = vsub.f32 %v1377_v14, %v1386_v24  ;;  %v1389_v57 = vmul.f32 %v1387_v29, %v1387_v29 }
 0x88f   :  { %v1391_v33 = vsel %vm169_vm0, %v1389_v57, 0.0  ;;  %v1390_v25 = vmul.f32 %v1388_v7, %v1388_v7 }
 0x890   :  { %1392 = vadd.xlane.f32.xlu0 %v1391_v33 }
 0x891   :  { %v1394_v37 = vsel %vm169_vm0, %v1390_v25, 0.0 }
 0x892   :  { %1395 = vadd.xlane.f32.xlu1 %v1394_v37 }
 0x893   :  { %v1608_v8 = vpop.xlane.xlu0 %1607 }
 0x894   :  { %v1618_v38 = vmul.f32 0.03125, %v1608_v8 }
 0x895   :  { %v1611_v45 = vpop.xlane.xlu1 %1610 }
 0x896   :  { %v1622_v0 = vsub.f32 %v1602_v41, %v1618_v38  ;;  %v1619_v9 = vmul.f32 0.03125, %v1611_v45 }
 0x897   :  { %v1614_v49 = vpop.xlane.xlu0 %1613 }
 0x898   :  { %v1623_v46 = vsub.f32 %v1603_v17, %v1619_v9  ;;  %v1620_v47 = vmul.f32 0.03125, %v1614_v49  ;;  %v1626_v48 = vmul.f32 %v1622_v0, %v1622_v0 }
 0x899   :  { %v1617_v51 = vpop.xlane.xlu1 %1616 }
 0x89a   :  { %v1624_v52 = vsub.f32 %v1604_v30, %v1620_v47  ;;  %v1621_v53 = vmul.f32 0.03125, %v1617_v51  ;;  %v1630_v26 = vsel %vm169_vm0, %v1626_v48, 0.0  ;;  %v1627_v54 = vmul.f32 %v1623_v46, %v1623_v46 }
 0x89b   :  { %1631 = vadd.xlane.f32.xlu0 %v1630_v26 }
 0x89c   :  { %v1625_v40 = vsub.f32 %v1605_v36, %v1621_v53  ;;  %v1633_v56 = vsel %vm169_vm0, %v1627_v54, 0.0  ;;  %v1628_v59 = vmul.f32 %v1624_v52, %v1624_v52  ;;  %v1661_v36 = vrot.slane %v89_v16, %v2369_v31 }
 0x89d   :  { %1634 = vadd.xlane.f32.xlu1 %v1633_v56 }
 0x89e   :  { %v1636_v60 = vsel %vm169_vm0, %v1628_v59, 0.0  ;;  %v1629_v2 = vmul.f32 %v1625_v40, %v1625_v40 }
 0x89f   :  { %1637 = vadd.xlane.f32.xlu0 %v1636_v60 }
 0x8a0   :  { %v1639_v4 = vsel %vm169_vm0, %v1629_v2, 0.0 }
 0x8a1   :  { %1640 = vadd.xlane.f32.xlu1 %v1639_v4 }
 0x91d   :  { %v1393_v12 = vpop.xlane.xlu0 %1392 }
 0x91e   :  { %v1397_v3 = vmul.f32 0.03125, %v1393_v12 }
 0x91f   :  { %v1396_v14 = vpop.xlane.xlu1 %1395 }
 0x920   :  { %v1399_v39 = vadd.f32 1e-05, %v1397_v3  ;;  %v1398_v58 = vmul.f32 0.03125, %v1396_v14 }
 0x922   :  { %2005 = vrsqrt.f32 %v1399_v39  ;;  %v1400_v62 = vadd.f32 1e-05, %v1398_v58 }
 0x924   :  { %2007 = vrsqrt.f32 %v1400_v62 }
 0x928   :  { %v1632_v10 = vpop.xlane.xlu0 %1631 }
 0x929   :  { %v1642_v55 = vmul.f32 0.03125, %v1632_v10 }
 0x92a   :  { %v1635_v61 = vpop.xlane.xlu1 %1634 }
 0x92b   :  { %v1646_v18 = vadd.f32 1e-05, %v1642_v55  ;;  %v1643_v13 = vmul.f32 0.03125, %v1635_v61 }
 0x92c   :  { %v2006_v11 = vpop.eup %2005  ;;  %v1638_v5 = vpop.xlane.xlu0 %1637 }
 0x92d   :  { %v1403_v28 = vmul.f32 %v2006_v11, %v1387_v29  ;;  %2009 = vrsqrt.f32 %v1646_v18  ;;  %v1647_v27 = vadd.f32 1e-05, %v1643_v13  ;;  %v1644_v50 = vmul.f32 0.03125, %v1638_v5 }
 0x92e   :  { %v2008_v1 = vpop.eup %2007  ;;  %v1641_v6 = vpop.xlane.xlu1 %1640 }
 0x92f   :  { %v1409_v41 = vmul.f32 %v1408_v44, %v1403_v28  ;;  %v1404_v35 = vmul.f32 %v2008_v1, %v1388_v7  ;;  %2011 = vrsqrt.f32 %v1647_v27  ;;  %v1648_v15 = vadd.f32 1e-05, %v1644_v50 }
 0x930   :  { %v1645_v17 = vmul.f32 0.03125, %v1641_v6 }
 0x931   :  { %v1415_v30 = vadd.f32 %v1414_v19, %v1409_v41  ;;  %v1410_v20 = vmul.f32 %v1408_v44, %v1404_v35  ;;  %2013 = vrsqrt.f32 %v1648_v15 }
 0x932   :  { %v1649_v22 = vadd.f32 1e-05, %v1645_v17 }
 0x933   :  { %1417 = vst.msk [vmem:[%s2613_s9] sm:$0xff] %vm169_vm0, %v1415_v30  ;;  %v1416_v63 = vadd.f32 %v1414_v19, %v1410_v20 }
 0x934   :  { %2015 = vrsqrt.f32 %v1649_v22 }
 0x935   :  { %1418 = vst.msk [vmem:[%s2613_s9 + $0x8] sm:$0xff] %vm169_vm0, %v1416_v63 }
 0x937   :  { %v2010_v23 = vpop.eup %2009 }
 0x938   :  { %v1654_v21 = vmul.f32 %v2010_v23, %v1622_v0 }
 0x939   :  { %v2012_v43 = vpop.eup %2011 }
 0x93a   :  { %v1662_v34 = vmul.f32 %v1661_v36, %v1654_v21  ;;  %v1655_v29 = vmul.f32 %v2012_v43, %v1623_v46 }
 0x93b   :  { %v2014_v24 = vpop.eup %2013 }
 0x93c   :  { %v1670_v7 = vadd.f32 %v1669_v42, %v1662_v34  ;;  %v1663_v57 = vmul.f32 %v1661_v36, %v1655_v29  ;;  %v1656_v33 = vmul.f32 %v2014_v24, %v1624_v52 }
 0x93e   :  { %v2016_v25 = vpop.eup %2015  ;;  %1674 = vst.msk [vmem:[%s2613_s9 + $0x10] sm:$0xff] %vm169_vm0, %v1670_v7  ;;  %v1671_v37 = vadd.f32 %v1669_v42, %v1663_v57  ;;  %v1664_v8 = vmul.f32 %v1661_v36, %v1656_v33 }
 0x93f   :  { %v1657_v31 = vmul.f32 %v2016_v25, %v1625_v40 }
 0x940   :  { %1675 = vst.msk [vmem:[%s2613_s9 + $0x18] sm:$0xff] %vm169_vm0, %v1671_v37  ;;  %v1672_v32 = vadd.f32 %v1669_v42, %v1664_v8 }
 0x941   :  { %v1665_v38 = vmul.f32 %v1661_v36, %v1657_v31 }
 0x942   :  { %1676 = vst.msk [vmem:[%s2613_s9 + $0x20] sm:$0xff] %vm169_vm0, %v1672_v32 }
 0x943   :  { %v1673_v45 = vadd.f32 %v1669_v42, %v1665_v38 }
 0x945   :  { %1677 = vst.msk [vmem:[%s2613_s9 + $0x28] sm:$0xff] %vm169_vm0, %v1673_v45 }
 0x946   :  { %1682 = vsyncpa [#allocation3], 1 }
 0x947   :  { %1683 = vsyncpa [#allocation6], 1 }
 0x948   :  { %1684 = vsyncpa [#allocation4], 1 }

</bundles_post_ra>
